<compile_context>
chip_gen: v7x
topology: tpu7x:2x2x1
jax: 0.10.0
libtpu: 0.0.40
codegen_flags: <defaults>
</compile_context>

<pallas_src>
import math
import jax
import jax.numpy as jnp
from jax.experimental import pallas as pl
from jax.experimental.pallas import tpu as pltpu

# ----------------------------- config (small, consistent with the module) ----
NODE_LEN   = 16          # embedding vocab size (in_dim_node)
HIDDEN_DIM = 32          # args.gcn_hidden_dim
OUT_DIM    = 32          # out_dim (MLPReadout(out_dim, out_dim))
N_NODES    = 64          # number of graph nodes
B_GRAPHS   = 8           # batched node-index sets sharing one graph (256 lanes)
K_HOPS     = 10          # APPNPConv(10, ...)
ALPHA      = 0.05        # APPNP teleport prob

D1 = OUT_DIM // 2        # MLPReadout hidden 1 (16)
D2 = OUT_DIM // 4        # MLPReadout hidden 2 (8)

LANES    = B_GRAPHS * HIDDEN_DIM   # 256: lane-stacked feature width (== B*OUT_DIM)
OH_LANES = B_GRAPHS * NODE_LEN     # 128: lane-stacked one-hot width

# -------- parameter-slab layout (all rows LANES=256 lanes wide, f32) ---------
# rows [W1_ROW : W1_ROW+LANES) : block-diag W1 (per-batch 32x16), zero-padded
# rows [W2_ROW : W2_ROW+LANES) : block-diag W2 (per-batch 16x8),  zero-padded
# rows [W3_ROW : W3_ROW+LANES) : block-diag W3 (per-batch  8x32), zero-padded
# row  B1_ROW / B2_ROW / B3_ROW: lane-tiled biases (zero in padded lanes)
W1_ROW = 0
W2_ROW = LANES
W3_ROW = 2 * LANES
B1_ROW = 3 * LANES
B2_ROW = 3 * LANES + 8
B3_ROW = 3 * LANES + 16
SLAB_ROWS = 3 * LANES + 24         # 792 (multiple of 8)
SLAB_LANES = LANES                 # 256


# ----------------------------- Pallas kernel ---------------------------------
def appnet_kernel(p_ref, emb_ref, tgt_ref, params_ref, out_ref):
    """One invocation: fused embedding gather + P@H0 propagation + MLP readout
    for all B lane-stacked batch elements at once."""
    n = p_ref.shape[0]                                             # 64 nodes

    # --- fused embedding gather on the MXU, directly in lane-stacked layout --
    # onehot[n, 16*b + v] = 1 iff batch b's node n has token v; emb_ref is the
    # block-diagonal embedding table, so H0[:, 32b:32b+32] = emb[idx[b, n]].
    lane_ids = jax.lax.broadcasted_iota(jnp.int32, (n, OH_LANES), 1)
    onehot = (lane_ids == tgt_ref[...]).astype(jnp.float32)        # (64, 128)
    h0 = jnp.dot(onehot, emb_ref[...],
                 preferred_element_type=jnp.float32)               # (64, 256)

    # --- APPNP propagation: precomputed 10-hop operator, one matmul ----------
    h = jnp.dot(p_ref[...], h0, preferred_element_type=jnp.float32)  # (64, 256)

    # --- MLP readout: Linear -> ReLU -> Linear -> ReLU -> Linear -------------
    # Block-diagonal per-batch weights, zero-padded to 256 lanes (padded lanes
    # stay exactly zero through ReLU, so the real lanes are exact).
    w1 = params_ref[W1_ROW:W1_ROW + LANES, :]                      # (256, 256)
    w2 = params_ref[W2_ROW:W2_ROW + LANES, :]                      # (256, 256)
    w3 = params_ref[W3_ROW:W3_ROW + LANES, :]                      # (256, 256)
    b1 = params_ref[B1_ROW:B1_ROW + 1, :]                          # (1, 256)
    b2 = params_ref[B2_ROW:B2_ROW + 1, :]                          # (1, 256)
    b3 = params_ref[B3_ROW:B3_ROW + 1, :]                          # (1, 256)

    y = jnp.maximum(jnp.dot(h, w1, preferred_element_type=jnp.float32) + b1, 0.0)
    y = jnp.maximum(jnp.dot(y, w2, preferred_element_type=jnp.float32) + b2, 0.0)
    y = jnp.dot(y, w3, preferred_element_type=jnp.float32) + b3    # (64, 256)

    out_ref[...] = y                                               # lane-dense store


def appnet_forward(p_op, emb_bd, lane_tgt, params_slab):
    """p_op: (N,N) 10-hop APPNP operator, emb_bd: (B*NODE_LEN, B*HIDDEN),
    lane_tgt: (N, B*NODE_LEN) int32, params_slab: (792, 256) f32.
    Returns (B, N, OUT_DIM) f32."""
    n = p_op.shape[0]
    out = pl.pallas_call(
        appnet_kernel,
        out_shape=jax.ShapeDtypeStruct((n, B_GRAPHS * OUT_DIM), jnp.float32),
        grid=(1,),
        in_specs=[
            pl.BlockSpec(p_op.shape,        lambda i: (0, 0)),     # shared operator
            pl.BlockSpec(emb_bd.shape,      lambda i: (0, 0)),     # block-diag emb
            pl.BlockSpec(lane_tgt.shape,    lambda i: (0, 0)),     # per-node targets
            pl.BlockSpec(params_slab.shape, lambda i: (0, 0)),     # MLP param slab
        ],
        out_specs=pl.BlockSpec((n, B_GRAPHS * OUT_DIM), lambda i: (0, 0)),
        compiler_params=pltpu.CompilerParams(
            dimension_semantics=("arbitrary",)),
    )(p_op, emb_bd, lane_tgt, params_slab)
    # lane-stacked (N, B*32) -> (B, N, 32); cheap wrapper-side XLA op.
    return out.reshape(n, B_GRAPHS, OUT_DIM).transpose(1, 0, 2)


# ----------------------------- glue: params, graph, precompute ---------------
def init_params(key):
    ks = jax.random.split(key, 8)
    # nn.Embedding(node_len, hidden_dim): N(0, 1)
    emb = jax.random.normal(ks[0], (NODE_LEN, HIDDEN_DIM), jnp.float32)

    def linear(kw, kb, fan_in, fan_out):
        # PyTorch nn.Linear default init: U(-1/sqrt(fan_in), 1/sqrt(fan_in))
        bound = 1.0 / math.sqrt(fan_in)
        w = jax.random.uniform(kw, (fan_in, fan_out), jnp.float32, -bound, bound)
        b = jax.random.uniform(kb, (1, fan_out), jnp.float32, -bound, bound)
        return w, b

    w1, b1 = linear(ks[1], ks[2], OUT_DIM, D1)
    w2, b2 = linear(ks[3], ks[4], D1, D2)
    w3, b3 = linear(ks[5], ks[6], D2, OUT_DIM)
    return emb, w1, b1, w2, b2, w3, b3


def pack_params(w1, b1, w2, b2, w3, b3):
    """Pack block-diagonal (per-batch) MLP params into one lane-dense slab."""
    slab = jnp.zeros((SLAB_ROWS, SLAB_LANES), jnp.float32)
    for b in range(B_GRAPHS):
        slab = slab.at[W1_ROW + b * HIDDEN_DIM: W1_ROW + (b + 1) * HIDDEN_DIM,
                       b * D1:(b + 1) * D1].set(w1)                 # (32, 16)
        slab = slab.at[W2_ROW + b * D1: W2_ROW + (b + 1) * D1,
                       b * D2:(b + 1) * D2].set(w2)                 # (16, 8)
        slab = slab.at[W3_ROW + b * D2: W3_ROW + (b + 1) * D2,
                       b * OUT_DIM:(b + 1) * OUT_DIM].set(w3)       # (8, 32)
        slab = slab.at[B1_ROW, b * D1:(b + 1) * D1].set(b1[0])
        slab = slab.at[B2_ROW, b * D2:(b + 1) * D2].set(b2[0])
        slab = slab.at[B3_ROW, b * OUT_DIM:(b + 1) * OUT_DIM].set(b3[0])
    return slab


def build_block_diag_emb(emb):
    """Block-diagonal embedding table so onehot @ emb_bd yields lane-stacked H0."""
    e = jnp.zeros((OH_LANES, LANES), jnp.float32)
    for b in range(B_GRAPHS):
        e = e.at[b * NODE_LEN:(b + 1) * NODE_LEN,
                 b * HIDDEN_DIM:(b + 1) * HIDDEN_DIM].set(emb)
    return e


def build_lane_targets(node_idx):
    """node_idx (B, N, 1) int32 -> (N, B*NODE_LEN) int32 lane targets, where
    lane block b of row n holds the value 16*b + idx[b, n]."""
    idx = jnp.squeeze(node_idx, axis=-1)                            # (B, N)
    tgt = idx.T + (jnp.arange(B_GRAPHS, dtype=jnp.int32)[None, :] * NODE_LEN)  # (N, B)
    return jnp.repeat(tgt, NODE_LEN, axis=1).astype(jnp.int32)      # (N, B*NODE_LEN)


def build_propagation_operator(a_hat):
    """Full 10-hop APPNP operator P: h_final = P @ h0 (built once, HIGHEST prec)."""
    n = a_hat.shape[0]
    eye = jnp.eye(n, dtype=jnp.float32)
    p = eye
    for _ in range(K_HOPS):
        p = (1.0 - ALPHA) * jnp.dot(a_hat, p,
                                    precision=jax.lax.Precision.HIGHEST) + ALPHA * eye
    return p


def build_graph(key, n):
    # Deterministic random directed graph + self loops; A[dst, src] = 1.
    a = (jax.random.uniform(key, (n, n)) < 0.08).astype(jnp.float32)
    a = a + jnp.eye(n, dtype=jnp.float32)
    a = jnp.minimum(a, 1.0)
    in_deg = jnp.clip(a.sum(axis=1), 1.0, None)    # in-degree of dst  (row sums)
    out_deg = jnp.clip(a.sum(axis=0), 1.0, None)   # out-degree of src (col sums)
    a_hat = (in_deg ** -0.5)[:, None] * a * (out_deg ** -0.5)[None, :]
    return a_hat


def reference_forward(a_hat, emb, node_idx, w1, b1, w2, b2, w3, b3):
    """Pure-JAX reference of the original module semantics (plain 10-hop loop)."""
    h0 = jnp.take(emb, jnp.squeeze(node_idx, axis=-1), axis=0)      # (B, N, D)
    h = h0
    for _ in range(K_HOPS):
        h = (1.0 - ALPHA) * jnp.einsum('ij,bjd->bid', a_hat, h) + ALPHA * h0
    y = jnp.maximum(h @ w1 + b1, 0.0)
    y = jnp.maximum(y @ w2 + b2, 0.0)
    return y @ w3 + b3


if __name__ == "__main__":
    key = jax.random.PRNGKey(0)
    k_param, k_graph, k_idx = jax.random.split(key, 3)

    emb, w1, b1, w2, b2, w3, b3 = init_params(k_param)
    a_hat = build_graph(k_graph, N_NODES)

    # Node "features" are token indices, shape (B, N, 1) -> embedded in-kernel.
    node_idx = jax.random.randint(k_idx, (B_GRAPHS, N_NODES, 1), 0, NODE_LEN,
                                  jnp.int32)

    # Batch-invariant precomputation (amortized across forward calls).
    p_op = build_propagation_operator(a_hat)        # (64, 64)
    emb_bd = build_block_diag_emb(emb)              # (128, 256)
    params_slab = pack_params(w1, b1, w2, b2, w3, b3)  # (792, 256)

    lane_tgt = build_lane_targets(node_idx)         # (64, 128)

    out = appnet_forward(p_op, emb_bd, lane_tgt, params_slab)
    jax.block_until_ready(out)

    ref = reference_forward(a_hat, emb, node_idx, w1, b1, w2, b2, w3, b3)
    assert out.shape == (B_GRAPHS, N_NODES, OUT_DIM), out.shape
    max_err = float(jnp.max(jnp.abs(out - ref)))
    assert max_err < 1e-4, max_err

    print("KERNEL_OK")
</pallas_src>

<mosaic_0001>
module attributes {stable_mosaic.version = 11 : i64} {
  func.func @appnet_kernel(%arg0: i32, %arg1: memref<64x64xf32, #tpu.memory_space<vmem>>, %arg2: memref<128x256xf32, #tpu.memory_space<vmem>>, %arg3: memref<64x128xi32, #tpu.memory_space<vmem>>, %arg4: memref<792x256xf32, #tpu.memory_space<vmem>>, %arg5: memref<64x256xf32, #tpu.memory_space<vmem>>) attributes {dimension_semantics = [#tpu.dimension_semantics<arbitrary>], iteration_bounds = array<i64: 1>, scalar_prefetch = 0 : i64, scratch_operands = 0 : i64, tpu.core_type = #tpu.core_type<tc>, window_params = [{pipeline_mode = #tpu.pipeline_mode<synchronous>, transform_indices = @transform_0, window_bounds = array<i64: 64, 64>}, {pipeline_mode = #tpu.pipeline_mode<synchronous>, transform_indices = @transform_1, window_bounds = array<i64: 128, 256>}, {pipeline_mode = #tpu.pipeline_mode<synchronous>, transform_indices = @transform_2, window_bounds = array<i64: 64, 128>}, {pipeline_mode = #tpu.pipeline_mode<synchronous>, transform_indices = @transform_3, window_bounds = array<i64: 792, 256>}, {pipeline_mode = #tpu.pipeline_mode<synchronous>, transform_indices = @transform_4, window_bounds = array<i64: 64, 256>}]} {
    %0 = tpu.iota {dimensions = array<i32: 1>} : vector<64x128xi32>
    %c0 = arith.constant 0 : index
    %c0_0 = arith.constant 0 : index
    %1 = vector.load %arg3[%c0, %c0_0] : memref<64x128xi32, #tpu.memory_space<vmem>>, vector<64x128xi32>
    %2 = arith.cmpi eq, %0, %1 : vector<64x128xi32>
    %3 = arith.extui %2 : vector<64x128xi1> to vector<64x128xi32>
    %4 = arith.sitofp %3 : vector<64x128xi32> to vector<64x128xf32>
    %c0_1 = arith.constant 0 : index
    %c0_2 = arith.constant 0 : index
    %5 = vector.load %arg2[%c0_1, %c0_2] : memref<128x256xf32, #tpu.memory_space<vmem>>, vector<128x256xf32>
    %cst = arith.constant dense<0.000000e+00> : vector<64x256xf32>
    %6 = tpu.matmul %4, %5, %cst {dimension_numbers = #tpu.dot_dimension_numbers<[1], [0], [0], [1], [0, 0, 1, 1], [], []>} : vector<64x128xf32>, vector<128x256xf32>, vector<64x256xf32> -> vector<64x256xf32>
    %c0_3 = arith.constant 0 : index
    %c0_4 = arith.constant 0 : index
    %7 = vector.load %arg1[%c0_3, %c0_4] : memref<64x64xf32, #tpu.memory_space<vmem>>, vector<64x64xf32>
    %cst_5 = arith.constant dense<0.000000e+00> : vector<64x256xf32>
    %8 = tpu.matmul %7, %6, %cst_5 {dimension_numbers = #tpu.dot_dimension_numbers<[1], [0], [0], [1], [0, 0, 1, 1], [], []>} : vector<64x64xf32>, vector<64x256xf32>, vector<64x256xf32> -> vector<64x256xf32>
    %c0_6 = arith.constant 0 : index
    %c0_7 = arith.constant 0 : index
    %9 = vector.load %arg4[%c0_6, %c0_7] : memref<792x256xf32, #tpu.memory_space<vmem>>, vector<256x256xf32>
    %c256 = arith.constant 256 : index
    %c0_8 = arith.constant 0 : index
    %10 = vector.load %arg4[%c256, %c0_8] : memref<792x256xf32, #tpu.memory_space<vmem>>, vector<256x256xf32>
    %c512 = arith.constant 512 : index
    %c0_9 = arith.constant 0 : index
    %11 = vector.load %arg4[%c512, %c0_9] : memref<792x256xf32, #tpu.memory_space<vmem>>, vector<256x256xf32>
    %c768 = arith.constant 768 : index
    %c0_10 = arith.constant 0 : index
    %12 = vector.load %arg4[%c768, %c0_10] : memref<792x256xf32, #tpu.memory_space<vmem>>, vector<1x256xf32>
    %c776 = arith.constant 776 : index
    %c0_11 = arith.constant 0 : index
    %13 = vector.load %arg4[%c776, %c0_11] : memref<792x256xf32, #tpu.memory_space<vmem>>, vector<1x256xf32>
    %c784 = arith.constant 784 : index
    %c0_12 = arith.constant 0 : index
    %14 = vector.load %arg4[%c784, %c0_12] : memref<792x256xf32, #tpu.memory_space<vmem>>, vector<1x256xf32>
    %cst_13 = arith.constant dense<0.000000e+00> : vector<64x256xf32>
    %15 = tpu.matmul %8, %9, %cst_13 {dimension_numbers = #tpu.dot_dimension_numbers<[1], [0], [0], [1], [0, 0, 1, 1], [], []>} : vector<64x256xf32>, vector<256x256xf32>, vector<64x256xf32> -> vector<64x256xf32>
    %16 = vector.broadcast %12 : vector<1x256xf32> to vector<64x256xf32>
    %17 = arith.addf %15, %16 : vector<64x256xf32>
    %cst_14 = arith.constant 0.000000e+00 : f32
    %18 = vector.broadcast %cst_14 : f32 to vector<64x256xf32>
    %19 = arith.maximumf %17, %18 : vector<64x256xf32>
    %cst_15 = arith.constant dense<0.000000e+00> : vector<64x256xf32>
    %20 = tpu.matmul %19, %10, %cst_15 {dimension_numbers = #tpu.dot_dimension_numbers<[1], [0], [0], [1], [0, 0, 1, 1], [], []>} : vector<64x256xf32>, vector<256x256xf32>, vector<64x256xf32> -> vector<64x256xf32>
    %21 = vector.broadcast %13 : vector<1x256xf32> to vector<64x256xf32>
    %22 = arith.addf %20, %21 : vector<64x256xf32>
    %cst_16 = arith.constant 0.000000e+00 : f32
    %23 = vector.broadcast %cst_16 : f32 to vector<64x256xf32>
    %24 = arith.maximumf %22, %23 : vector<64x256xf32>
    %cst_17 = arith.constant dense<0.000000e+00> : vector<64x256xf32>
    %25 = tpu.matmul %24, %11, %cst_17 {dimension_numbers = #tpu.dot_dimension_numbers<[1], [0], [0], [1], [0, 0, 1, 1], [], []>} : vector<64x256xf32>, vector<256x256xf32>, vector<64x256xf32> -> vector<64x256xf32>
    %26 = vector.broadcast %14 : vector<1x256xf32> to vector<64x256xf32>
    %27 = arith.addf %25, %26 : vector<64x256xf32>
    %c0_18 = arith.constant 0 : index
    %c0_19 = arith.constant 0 : index
    %28 = vector.load %arg5[%c0_18, %c0_19] : memref<64x256xf32, #tpu.memory_space<vmem>>, vector<64x256xf32>
    tpu.vector_store %arg5[%c0_18, %c0_19], %27 {strides = array<i32>} : memref<64x256xf32, #tpu.memory_space<vmem>>, vector<64x256xf32>,
    return
  }
  func.func @transform_0(%arg0: i32) -> (i32, i32) {
    %c0_i32 = arith.constant 0 : i32
    %c0_i32_0 = arith.constant 0 : i32
    %c0_i32_1 = arith.constant 0 : i32
    return %c0_i32, %c0_i32_0 : i32, i32
  }
  func.func @transform_1(%arg0: i32) -> (i32, i32) {
    %c0_i32 = arith.constant 0 : i32
    %c0_i32_0 = arith.constant 0 : i32
    %c0_i32_1 = arith.constant 0 : i32
    return %c0_i32, %c0_i32_0 : i32, i32
  }
  func.func @transform_2(%arg0: i32) -> (i32, i32) {
    %c0_i32 = arith.constant 0 : i32
    %c0_i32_0 = arith.constant 0 : i32
    %c0_i32_1 = arith.constant 0 : i32
    return %c0_i32, %c0_i32_0 : i32, i32
  }
  func.func @transform_3(%arg0: i32) -> (i32, i32) {
    %c0_i32 = arith.constant 0 : i32
    %c0_i32_0 = arith.constant 0 : i32
    %c0_i32_1 = arith.constant 0 : i32
    return %c0_i32, %c0_i32_0 : i32, i32
  }
  func.func @transform_4(%arg0: i32) -> (i32, i32) {
    %c0_i32 = arith.constant 0 : i32
    %c0_i32_0 = arith.constant 0 : i32
    %c0_i32_1 = arith.constant 0 : i32
    return %c0_i32, %c0_i32_0 : i32, i32
  }
}

</mosaic_0001>

<bundles_post_ra>
// kernel: tpu_custom_call.1
= control target key start
LH: loop header
LB: loop body
LE: loop exit
PB: predicated region body
PF: predicated region fallthrough
CT: control target
= control target key end

     0   :  { %9 = vsyncpa [#allocation3], 0  ;;  %s1576_s0 = inlined_call_operand.hbm [shape: f32[64,64], index: 0, kind: input, shape index: {}]   ;;  %s1577_s1 = inlined_call_operand.hbm [shape: f32[128,256], index: 1, kind: input, shape index: {}]   ;;  %s1578_s2 = inlined_call_operand.hbm [shape: s32[64,128], index: 2, kind: input, shape index: {}]   ;;  %s1579_s3 = inlined_call_operand.hbm [shape: f32[792,256], index: 3, kind: input, shape index: {}]   ;;  %s1580_s4 = inlined_call_operand.hbm [shape: f32[64,256], index: 4, kind: output, shape index: {}]  }
   0x1   :  { %10 = vsyncpa [#allocation6], 0 }
   0x2   :  { %11 = vsyncpa [#allocation9], 0 }
   0x3   :  { %12 = vsyncpa [#allocation4], 0  ;;  %s1428_s15 = smov [#allocation5]   ;;  %s1310_s19 = scalar_lea.hbm %s1577_s1, 4096 }
   0x4   :  { %s30_s16 = sshll.u32 %s1428_s15, 4  ;;  %p1311_p0 = scmp.ne.s32.totalorder %s1577_s1, %s1310_s19  ;;  %s31_s16 = int_to_ptr.vmem [resolvable:$true] %s30_s16 }
   0x5   :  { %p1314_p1 = scmp.lt.u32.totalorder %s1310_s19, %s1577_s1 }
   0x7   :  { %p1316_p2 = pnand %p1314_p1, %p1311_p0 }
   0x9   :  { %1319 = shalt.err (!%p1316_p2)
}
   0xa   :  { %s1320_s24 = scalar_lea.vmem %s31_s16, 4096  ;;  %p1325_p4 = scmp.lt.s32.totalorder %s31_s16, %s31_s16 }
   0xb   :  { %p1321_p3 = scmp.ne.s32.totalorder %s31_s16, %s1320_s24  ;;  %p1326_p5 = scmp.lt.s32.totalorder %s1320_s24, %s1320_s24 }
   0xd   :  { %p1327_p6 = por %p1326_p5, %p1325_p4 }
   0xf   :  { %p1328_p7 = pnand %p1327_p6, %p1321_p3 }
  0x11   :  { %1331 = shalt.err (!%p1328_p7)
}
  0x12   :  { %s1429_s25 = smov 256   ;;  %s1430_s26 = smov 16  }
  0x13   :  { %36 = dma.hbm_to_vmem [thread:$0]  %s1577_s1, 4096, %s31_s16, [#allocation6], %s1429_s25, %s1429_s25, %s1430_s26  }
  0x14   :  { %s1431_s29 = smov [#allocation2]   ;;  %s1332_s7 = scalar_lea.hbm %s1576_s0, 1024 }
  0x15   :  { %s18_s30 = sshll.u32 %s1431_s29, 4  ;;  %p1333_p8 = scmp.ne.s32.totalorder %s1576_s0, %s1332_s7  ;;  %s19_s30 = int_to_ptr.vmem [resolvable:$true] %s18_s30 }
  0x16   :  { %p1336_p9 = scmp.lt.u32.totalorder %s1332_s7, %s1576_s0 }
  0x18   :  { %p1338_p10 = pnand %p1336_p9, %p1333_p8 }
  0x1a   :  { %1341 = shalt.err (!%p1338_p10)
}
  0x1b   :  { %s1342_s12 = scalar_lea.vmem %s19_s30, 1024  ;;  %p1347_p12 = scmp.lt.s32.totalorder %s19_s30, %s19_s30 }
  0x1c   :  { %p1343_p11 = scmp.ne.s32.totalorder %s19_s30, %s1342_s12  ;;  %p1348_p13 = scmp.lt.s32.totalorder %s1342_s12, %s1342_s12 }
  0x1e   :  { %p1349_p0 = por %p1348_p13, %p1347_p12 }
  0x20   :  { %p1350_p1 = pnand %p1349_p0, %p1343_p11 }
  0x22   :  { %1353 = shalt.err (!%p1350_p1)
}
  0x23   :  { %s1432_s1 = smov 128   ;;  %s1433_s13 = smov 8  }
  0x24   :  { %24 = dma.hbm_to_vmem [thread:$0]  %s1576_s0, 1024, %s19_s30, [#allocation3], %s1432_s1, %s1432_s1, %s1433_s13  }
  0x25   :  { %s1434_s16 = smov [#allocation7]   ;;  %s1435_s18 = smov [#allocation8]  }
  0x26   :  { %s42_s17 = sshll.u32 %s1434_s16, 4  ;;  %s54_s19 = sshll.u32 %s1435_s18, 4  ;;  %s43_s17 = int_to_ptr.vmem [resolvable:$true] %s42_s17  ;;  %s1491_s19 = int_to_ptr.vmem [resolvable:$true] %s54_s19 }
  0x27   :  { %s1354_s22 = scalar_lea.hbm %s1578_s2, 1024 }
  0x28   :  { %p1355_p2 = scmp.ne.s32.totalorder %s1578_s2, %s1354_s22  ;;  %p1358_p3 = scmp.lt.u32.totalorder %s1354_s22, %s1578_s2 }
  0x2a   :  { %p1360_p4 = pnand %p1358_p3, %p1355_p2 }
  0x2c   :  { %1363 = shalt.err (!%p1360_p4)
}
  0x2d   :  { %s1364_s0 = scalar_lea.vmem %s43_s17, 1024  ;;  %p1369_p6 = scmp.lt.s32.totalorder %s43_s17, %s43_s17 }
  0x2e   :  { %p1365_p5 = scmp.ne.s32.totalorder %s43_s17, %s1364_s0  ;;  %p1370_p7 = scmp.lt.s32.totalorder %s1364_s0, %s1364_s0 }
  0x30   :  { %p1371_p8 = por %p1370_p7, %p1369_p6 }
  0x32   :  { %p1372_p9 = pnand %p1371_p8, %p1365_p5 }
  0x34   :  { %1375 = shalt.err (!%p1372_p9)
}
  0x35   :  { %48 = dma.hbm_to_vmem [thread:$0]  %s1578_s2, 1024, %s43_s17, [#allocation6], %s1432_s1, %s1432_s1, %s1433_s13  }
  0x36   :  { %s1376_s7 = scalar_lea.hbm %s1579_s3, 25344 }
  0x37   :  { %p1377_p10 = scmp.ne.s32.totalorder %s1579_s3, %s1376_s7  ;;  %p1380_p11 = scmp.lt.u32.totalorder %s1376_s7, %s1579_s3 }
  0x39   :  { %p1382_p12 = pnand %p1380_p11, %p1377_p10 }
  0x3b   :  { %1385 = shalt.err (!%p1382_p12)
}
  0x3c   :  { %s1386_s12 = scalar_lea.vmem %s1491_s19, 25344  ;;  %p1391_p0 = scmp.lt.s32.totalorder %s1491_s19, %s1491_s19 }
  0x3d   :  { %p1387_p13 = scmp.ne.s32.totalorder %s1491_s19, %s1386_s12  ;;  %p1392_p1 = scmp.lt.s32.totalorder %s1386_s12, %s1386_s12 }
  0x3f   :  { %p1393_p2 = por %p1392_p1, %p1391_p0 }
  0x41   :  { %p1394_p3 = pnand %p1393_p2, %p1387_p13 }
  0x43   :  { %1397 = shalt.err (!%p1394_p3)
}
  0x44   :  { %60 = dma.hbm_to_vmem [thread:$0]  %s1579_s3, 25344, %s1491_s19, [#allocation9], %s1429_s25, %s1429_s25, %s1430_s26  }
  0x45   :  { %1420 = dma.done.wait [#allocation3], 1024  }
  0x46   :  { %1421 = vsyncadd [#allocation3], 4294966272 }
  0x47   :  { %1422 = dma.done.wait [#allocation6], 5120  }
  0x48   :  { %1423 = vsyncadd [#allocation6], 4294962176 }
  0x49   :  { %1424 = dma.done.wait [#allocation9], 25344  }
  0x4a   :  { %1425 = vsyncadd [#allocation9], 4294941952  ;;  %v1436_v0 = vmov 0.0   ;;  %v108_v1 = vld [vmem:[#allocation5 + $0x8] sm:$0xff]  ;;  %v110_v2 = vld [vmem:[#allocation5 + $0x18] sm:$0xff]  ;;  %v73_v45 = vlaneseq  ;;  %v1437_v53 = vmov 1.0  }
  0x4b   :  { %203 = vmatprep.mubr.f32.mxu0 %v1436_v0  ;;  %v107_v3 = vld [vmem:[#allocation5] sm:$0xff]  ;;  %v1059_v4 = vpack.c.bf16 %v110_v2, %v108_v1  ;;  %v109_v5 = vld [vmem:[#allocation5 + $0x10] sm:$0xff]  ;;  %v112_v6 = vld [vmem:[#allocation5 + $0x28] sm:$0xff]  ;;  %vm260_vm8 = vcmask 523264   ;;  %s1438_s3 = smov [#allocation10]  }
  0x4c   :  { %v114_v7 = vld [vmem:[#allocation5 + $0x38] sm:$0xff]  ;;  %v1061_v8 = vpack.c.bf16 %v109_v5, %v107_v3  ;;  %v111_v10 = vld [vmem:[#allocation5 + $0x20] sm:$0xff]  ;;  %v113_v11 = vld [vmem:[#allocation5 + $0x30] sm:$0xff]  ;;  %v74_v50 = vand.u32 127, %v73_v45  ;;  %s1021_s13 = sshll.u32 %s1438_s3, 4  ;;  %s1022_s13 = int_to_ptr.vmem [resolvable:$true] %s1021_s13 }
  0x4d   :  { %v1063_v9 = vpack.c.bf16 %v114_v7, %v112_v6  ;;  %v116_v12 = vld [vmem:[#allocation5 + $0x48] sm:$0xff]  ;;  %1060 = vmatprep.subr.bf16.mxu0 %v1059_v4  ;;  %v118_v13 = vld [vmem:[#allocation5 + $0x58] sm:$0xff]  ;;  %v1065_v14 = vpack.c.bf16 %v113_v11, %v111_v10  ;;  %v115_v16 = vld [vmem:[#allocation5 + $0x40] sm:$0xff]  ;;  %s1398_s14 = scalar_lea.vmem %s1022_s13, 2048  ;;  %p1403_p5 = scmp.lt.s32.totalorder %s1022_s13, %s1022_s13 }
  0x4e   :  { %1062 = vmatpush1.bf16.msra.mxu0 %v1061_v8  ;;  %v1067_v15 = vpack.c.bf16 %v118_v13, %v116_v12  ;;  %v117_v17 = vld [vmem:[#allocation5 + $0x50] sm:$0xff]  ;;  %v120_v18 = vld [vmem:[#allocation5 + $0x68] sm:$0xff]  ;;  %v122_v19 = vld [vmem:[#allocation5 + $0x78] sm:$0xff]  ;;  %p1399_p4 = scmp.ne.s32.totalorder %s1022_s13, %s1398_s14  ;;  %p1404_p6 = scmp.lt.s32.totalorder %s1398_s14, %s1398_s14 }
  0x4f   :  { %1064 = vmatprep.subr.bf16.mxu0 %v1063_v9  ;;  %v1069_v20 = vpack.c.bf16 %v117_v17, %v115_v16  ;;  %v1071_v21 = vpack.c.bf16 %v122_v19, %v120_v18  ;;  %v119_v22 = vld [vmem:[#allocation5 + $0x60] sm:$0xff]  ;;  %v121_v23 = vld [vmem:[#allocation5 + $0x70] sm:$0xff]  ;;  %v124_v24 = vld [vmem:[#allocation5 + $0x88] sm:$0xff] }
  0x50   :  { %v126_v25 = vld [vmem:[#allocation5 + $0x98] sm:$0xff]  ;;  %v1073_v26 = vpack.c.bf16 %v121_v23, %v119_v22  ;;  %v123_v28 = vld [vmem:[#allocation5 + $0x80] sm:$0xff]  ;;  %v125_v29 = vld [vmem:[#allocation5 + $0x90] sm:$0xff]  ;;  %p1405_p7 = por %p1404_p6, %p1403_p5 }
  0x51   :  { %v1075_v27 = vpack.c.bf16 %v126_v25, %v124_v24  ;;  %v128_v30 = vld [vmem:[#allocation5 + $0xa8] sm:$0xff]  ;;  %v130_v31 = vld [vmem:[#allocation5 + $0xb8] sm:$0xff]  ;;  %v1077_v32 = vpack.c.bf16 %v125_v29, %v123_v28  ;;  %v127_v34 = vld [vmem:[#allocation5 + $0xa0] sm:$0xff] }
  0x52   :  { %1066 = vmatpush1.bf16.msra.mxu0 %v1065_v14  ;;  %v1079_v33 = vpack.c.bf16 %v130_v31, %v128_v30  ;;  %v129_v35 = vld [vmem:[#allocation5 + $0xb0] sm:$0xff]  ;;  %v132_v36 = vld [vmem:[#allocation5 + $0xc8] sm:$0xff]  ;;  %v134_v37 = vld [vmem:[#allocation5 + $0xd8] sm:$0xff]  ;;  %p1406_p8 = pnand %p1405_p7, %p1399_p4 }
  0x53   :  { %1068 = vmatprep.subr.bf16.mxu0 %v1067_v15  ;;  %v1081_v38 = vpack.c.bf16 %v129_v35, %v127_v34  ;;  %v1083_v39 = vpack.c.bf16 %v134_v37, %v132_v36  ;;  %v131_v40 = vld [vmem:[#allocation5 + $0xc0] sm:$0xff]  ;;  %v133_v41 = vld [vmem:[#allocation5 + $0xd0] sm:$0xff]  ;;  %v136_v42 = vld [vmem:[#allocation5 + $0xe8] sm:$0xff] }
  0x54   :  { %v138_v43 = vld [vmem:[#allocation5 + $0xf8] sm:$0xff]  ;;  %v1085_v44 = vpack.c.bf16 %v133_v41, %v131_v40  ;;  %v135_v47 = vld [vmem:[#allocation5 + $0xe0] sm:$0xff]  ;;  %v137_v48 = vld [vmem:[#allocation5 + $0xf0] sm:$0xff] }
  0x55   :  { %v1087_v46 = vpack.c.bf16 %v138_v43, %v136_v42  ;;  %v1089_v49 = vpack.c.bf16 %v137_v48, %v135_v47  ;;  %v75_v51 = vld [vmem:[#allocation7] sm:$0xff]  ;;  %v76_v52 = vld [vmem:[#allocation7 + $0x8] sm:$0xff]  ;;  %v77_v54 = vld [vmem:[#allocation7 + $0x10] sm:$0xff] }
  0x56   :  { %1070 = vmatpush1.bf16.msra.mxu0 %v1069_v20  ;;  %vm83_vm0 = vcmp.eq.s32.totalorder %v74_v50, %v75_v51  ;;  %vm84_vm1 = vcmp.eq.s32.totalorder %v74_v50, %v76_v52  ;;  %vm85_vm2 = vcmp.eq.s32.totalorder %v74_v50, %v77_v54  ;;  %v78_v55 = vld [vmem:[#allocation7 + $0x18] sm:$0xff]  ;;  %v79_v56 = vld [vmem:[#allocation7 + $0x20] sm:$0xff]  ;;  %v80_v57 = vld [vmem:[#allocation7 + $0x28] sm:$0xff] }
  0x57   :  { %1072 = vmatprep.subr.bf16.mxu0 %v1071_v21  ;;  %vm86_vm3 = vcmp.eq.s32.totalorder %v74_v50, %v78_v55  ;;  %vm87_vm4 = vcmp.eq.s32.totalorder %v74_v50, %v79_v56  ;;  %vm88_vm5 = vcmp.eq.s32.totalorder %v74_v50, %v80_v57  ;;  %v81_v58 = vld [vmem:[#allocation7 + $0x30] sm:$0xff]  ;;  %v82_v59 = vld [vmem:[#allocation7 + $0x38] sm:$0xff]  ;;  %v399_v60 = vld [vmem:[#allocation8 + $0x8] sm:$0xff] }
  0x58   :  { %vm89_vm6 = vcmp.eq.s32.totalorder %v74_v50, %v81_v58  ;;  %vm90_vm7 = vcmp.eq.s32.totalorder %v74_v50, %v82_v59  ;;  %v401_v61 = vld [vmem:[#allocation8 + $0x18] sm:$0xff]  ;;  %v398_v62 = vld [vmem:[#allocation8] sm:$0xff]  ;;  %v400_v1 = vld [vmem:[#allocation8 + $0x10] sm:$0xff] }
  0x59   :  { %v1107_v63 = vpack.c.bf16 %v401_v61, %v399_v60  ;;  %v403_v2 = vld [vmem:[#allocation8 + $0x28] sm:$0xff]  ;;  %v405_v3 = vld [vmem:[#allocation8 + $0x38] sm:$0xff]  ;;  %v1109_v4 = vpack.c.bf16 %v400_v1, %v398_v62  ;;  %v402_v6 = vld [vmem:[#allocation8 + $0x20] sm:$0xff] }
  0x5a   :  { %1074 = vmatpush1.bf16.msra.mxu0 %v1073_v26  ;;  %v1111_v5 = vpack.c.bf16 %v405_v3, %v403_v2  ;;  %v404_v7 = vld [vmem:[#allocation8 + $0x30] sm:$0xff]  ;;  %v407_v8 = vld [vmem:[#allocation8 + $0x48] sm:$0xff]  ;;  %v409_v9 = vld [vmem:[#allocation8 + $0x58] sm:$0xff] }
  0x5b   :  { %1076 = vmatprep.subr.bf16.mxu0 %v1075_v27  ;;  %1108 = vmatprep.subr.bf16.mxu1 %v1107_v63  ;;  %v1113_v10 = vpack.c.bf16 %v404_v7, %v402_v6  ;;  %v1115_v11 = vpack.c.bf16 %v409_v9, %v407_v8  ;;  %v406_v12 = vld [vmem:[#allocation8 + $0x40] sm:$0xff]  ;;  %v408_v13 = vld [vmem:[#allocation8 + $0x50] sm:$0xff]  ;;  %v411_v14 = vld [vmem:[#allocation8 + $0x68] sm:$0xff] }
  0x5c   :  { %1110 = vmatpush1.bf16.msra.mxu1 %v1109_v4  ;;  %v413_v15 = vld [vmem:[#allocation8 + $0x78] sm:$0xff]  ;;  %v1117_v16 = vpack.c.bf16 %v408_v13, %v406_v12  ;;  %v410_v18 = vld [vmem:[#allocation8 + $0x60] sm:$0xff]  ;;  %v412_v19 = vld [vmem:[#allocation8 + $0x70] sm:$0xff] }
  0x5d   :  { %1112 = vmatprep.subr.bf16.mxu1 %v1111_v5  ;;  %v1119_v17 = vpack.c.bf16 %v413_v15, %v411_v14  ;;  %v415_v20 = vld [vmem:[#allocation8 + $0x88] sm:$0xff]  ;;  %v417_v21 = vld [vmem:[#allocation8 + $0x98] sm:$0xff]  ;;  %v1121_v22 = vpack.c.bf16 %v412_v19, %v410_v18  ;;  %v414_v24 = vld [vmem:[#allocation8 + $0x80] sm:$0xff] }
  0x5e   :  { %1078 = vmatpush1.bf16.msra.mxu0 %v1077_v32  ;;  %v1123_v23 = vpack.c.bf16 %v417_v21, %v415_v20  ;;  %v416_v25 = vld [vmem:[#allocation8 + $0x90] sm:$0xff]  ;;  %v419_v26 = vld [vmem:[#allocation8 + $0xa8] sm:$0xff]  ;;  %v421_v27 = vld [vmem:[#allocation8 + $0xb8] sm:$0xff] }
  0x5f   :  { %1080 = vmatprep.subr.bf16.mxu0 %v1079_v33  ;;  %v1125_v28 = vpack.c.bf16 %v416_v25, %v414_v24  ;;  %v1127_v29 = vpack.c.bf16 %v421_v27, %v419_v26  ;;  %v418_v30 = vld [vmem:[#allocation8 + $0xa0] sm:$0xff]  ;;  %v420_v31 = vld [vmem:[#allocation8 + $0xb0] sm:$0xff]  ;;  %v423_v32 = vld [vmem:[#allocation8 + $0xc8] sm:$0xff] }
  0x60   :  { %1114 = vmatpush1.bf16.msra.mxu1 %v1113_v10  ;;  %v425_v33 = vld [vmem:[#allocation8 + $0xd8] sm:$0xff]  ;;  %v1129_v34 = vpack.c.bf16 %v420_v31, %v418_v30  ;;  %v422_v36 = vld [vmem:[#allocation8 + $0xc0] sm:$0xff]  ;;  %v424_v37 = vld [vmem:[#allocation8 + $0xd0] sm:$0xff] }
  0x61   :  { %1116 = vmatprep.subr.bf16.mxu1 %v1115_v11  ;;  %v1131_v35 = vpack.c.bf16 %v425_v33, %v423_v32  ;;  %v1133_v40 = vpack.c.bf16 %v424_v37, %v422_v36  ;;  %v426_v42 = vld [vmem:[#allocation8 + $0xe0] sm:$0xff]  ;;  %v428_v43 = vld [vmem:[#allocation8 + $0xf0] sm:$0xff]  ;;  %v435_v51 = vld [vmem:[#allocation8 + $0x128] sm:$0xff] }
  0x62   :  { %1082 = vmatpush1.bf16.msra.mxu0 %v1081_v38  ;;  %v427_v38 = vld [vmem:[#allocation8 + $0xe8] sm:$0xff]  ;;  %v1137_v47 = vpack.c.bf16 %v428_v43, %v426_v42  ;;  %v432_v50 = vld [vmem:[#allocation8 + $0x110] sm:$0xff]  ;;  %v437_v52 = vld [vmem:[#allocation8 + $0x138] sm:$0xff] }
  0x63   :  { %1084 = vmatprep.subr.bf16.mxu0 %v1083_v39  ;;  %v429_v39 = vld [vmem:[#allocation8 + $0xf8] sm:$0xff]  ;;  %v1143_v54 = vpack.c.bf16 %v437_v52, %v435_v51  ;;  %v434_v55 = vld [vmem:[#allocation8 + $0x120] sm:$0xff]  ;;  %v436_v56 = vld [vmem:[#allocation8 + $0x130] sm:$0xff] }
  0x64   :  { %1118 = vmatpush1.bf16.msra.mxu1 %v1117_v16  ;;  %v1135_v41 = vpack.c.bf16 %v429_v39, %v427_v38  ;;  %v439_v57 = vld [vmem:[#allocation8 + $0x148] sm:$0xff]  ;;  %v441_v58 = vld [vmem:[#allocation8 + $0x158] sm:$0xff]  ;;  %v1145_v59 = vpack.c.bf16 %v436_v56, %v434_v55  ;;  %v438_v61 = vld [vmem:[#allocation8 + $0x140] sm:$0xff] }
  0x65   :  { %1120 = vmatprep.subr.bf16.mxu1 %v1119_v17  ;;  %v1147_v60 = vpack.c.bf16 %v441_v58, %v439_v57  ;;  %v440_v62 = vld [vmem:[#allocation8 + $0x150] sm:$0xff]  ;;  %v443_v63 = vld [vmem:[#allocation8 + $0x168] sm:$0xff]  ;;  %v445_v1 = vld [vmem:[#allocation8 + $0x178] sm:$0xff] }
  0x66   :  { %1086 = vmatpush1.bf16.msra.mxu0 %v1085_v44  ;;  %v431_v44 = vld [vmem:[#allocation8 + $0x108] sm:$0xff]  ;;  %v1149_v2 = vpack.c.bf16 %v440_v62, %v438_v61  ;;  %v1151_v3 = vpack.c.bf16 %v445_v1, %v443_v63  ;;  %v442_v4 = vld [vmem:[#allocation8 + $0x160] sm:$0xff]  ;;  %v444_v5 = vld [vmem:[#allocation8 + $0x170] sm:$0xff] }
  0x67   :  { %1088 = vmatprep.subr.bf16.mxu0 %v1087_v46  ;;  %v433_v46 = vld [vmem:[#allocation8 + $0x118] sm:$0xff]  ;;  %v447_v6 = vld [vmem:[#allocation8 + $0x188] sm:$0xff]  ;;  %v1153_v8 = vpack.c.bf16 %v444_v5, %v442_v4  ;;  %v446_v10 = vld [vmem:[#allocation8 + $0x180] sm:$0xff] }
  0x68   :  { %1122 = vmatpush1.bf16.msra.mxu1 %v1121_v22  ;;  %v1139_v48 = vpack.c.bf16 %v433_v46, %v431_v44  ;;  %v449_v7 = vld [vmem:[#allocation8 + $0x198] sm:$0xff]  ;;  %v448_v11 = vld [vmem:[#allocation8 + $0x190] sm:$0xff]  ;;  %v451_v12 = vld [vmem:[#allocation8 + $0x1a8] sm:$0xff] }
  0x69   :  { %1124 = vmatprep.subr.bf16.mxu1 %v1123_v23  ;;  %v1155_v9 = vpack.c.bf16 %v449_v7, %v447_v6  ;;  %v453_v13 = vld [vmem:[#allocation8 + $0x1b8] sm:$0xff]  ;;  %v1157_v14 = vpack.c.bf16 %v448_v11, %v446_v10  ;;  %v450_v16 = vld [vmem:[#allocation8 + $0x1a0] sm:$0xff]  ;;  %v452_v17 = vld [vmem:[#allocation8 + $0x1b0] sm:$0xff] }
  0x6a   :  { %1090 = vmatpush1.bf16.msra.mxu0 %v1089_v49  ;;  %v430_v49 = vld [vmem:[#allocation8 + $0x100] sm:$0xff]  ;;  %v1159_v15 = vpack.c.bf16 %v453_v13, %v451_v12  ;;  %v455_v18 = vld [vmem:[#allocation8 + $0x1c8] sm:$0xff]  ;;  %v457_v19 = vld [vmem:[#allocation8 + $0x1d8] sm:$0xff]  ;;  %v1161_v20 = vpack.c.bf16 %v452_v17, %v450_v16 }
  0x6b   :  { %v1163_v21 = vpack.c.bf16 %v457_v19, %v455_v18  ;;  %v454_v22 = vld [vmem:[#allocation8 + $0x1c0] sm:$0xff]  ;;  %v456_v23 = vld [vmem:[#allocation8 + $0x1d0] sm:$0xff]  ;;  %v459_v24 = vld [vmem:[#allocation8 + $0x1e8] sm:$0xff] }
  0x6c   :  { %1126 = vmatpush1.bf16.msra.mxu1 %v1125_v28  ;;  %v461_v25 = vld [vmem:[#allocation8 + $0x1f8] sm:$0xff]  ;;  %v1165_v26 = vpack.c.bf16 %v456_v23, %v454_v22  ;;  %v254_v55 = vld [vmem:[#allocation2 + $0x10] sm:$0xff]  ;;  %v256_v57 = vld [vmem:[#allocation2 + $0x20] sm:$0xff] }
  0x6d   :  { %1043 = vmatmul.mubr.msk.f32.vlgmr.msra.gmra.mrb[0].mxu0 %vm83_vm0, %v1437_v53  ;;  %1128 = vmatprep.subr.bf16.mxu1 %v1127_v29  ;;  %v1167_v27 = vpack.c.bf16 %v461_v25, %v459_v24  ;;  %v255_v56 = vld [vmem:[#allocation2 + $0x18] sm:$0xff]  ;;  %v257_v58 = vld [vmem:[#allocation2 + $0x28] sm:$0xff]  ;;  %v458_v61 = vld [vmem:[#allocation8 + $0x1e0] sm:$0xff] }
  0x6e   :  { %209 = vmatprep.mubr.f32.mxu0 %v1436_v0  ;;  %v460_v62 = vld [vmem:[#allocation8 + $0x1f0] sm:$0xff]  ;;  %v463_v1 = vld [vmem:[#allocation8 + $0x208] sm:$0xff]  ;;  %v469_v7 = vld [vmem:[#allocation8 + $0x238] sm:$0xff] }
  0x6f   :  { %v1169_v63 = vpack.c.bf16 %v460_v62, %v458_v61  ;;  %v464_v5 = vld [vmem:[#allocation8 + $0x210] sm:$0xff]  ;;  %v467_v6 = vld [vmem:[#allocation8 + $0x228] sm:$0xff]  ;;  %v466_v10 = vld [vmem:[#allocation8 + $0x220] sm:$0xff] }
  0x70   :  { %1130 = vmatpush1.bf16.msra.mxu1 %v1129_v34  ;;  %v468_v11 = vld [vmem:[#allocation8 + $0x230] sm:$0xff]  ;;  %v471_v12 = vld [vmem:[#allocation8 + $0x248] sm:$0xff]  ;;  %v477_v18 = vld [vmem:[#allocation8 + $0x278] sm:$0xff] }
  0x71   :  { %1044 = vmatmul.mubr.msk.f32.gmra.mrb[2].mxu0 %vm84_vm1, %v1437_v53  ;;  %1132 = vmatprep.subr.bf16.mxu1 %v1131_v35  ;;  %v1177_v13 = vpack.c.bf16 %v468_v11, %v466_v10  ;;  %v472_v16 = vld [vmem:[#allocation8 + $0x250] sm:$0xff]  ;;  %v475_v17 = vld [vmem:[#allocation8 + $0x268] sm:$0xff]  ;;  %v481_v24 = vld [vmem:[#allocation8 + $0x298] sm:$0xff] }
  0x72   :  { %215 = vmatprep.mubr.f32.mxu0 %v1436_v0  ;;  %v476_v22 = vld [vmem:[#allocation8 + $0x270] sm:$0xff]  ;;  %v479_v23 = vld [vmem:[#allocation8 + $0x288] sm:$0xff]  ;;  %v505_v61 = vld [vmem:[#allocation8 + $0x358] sm:$0xff] }
  0x73   :  { %v513_v10 = vld [vmem:[#allocation8 + $0x398] sm:$0xff] }
  0x74   :  { %1134 = vmatpush1.bf16.msra.mxu1 %v1133_v40 }
  0x75   :  { %1045 = vmatmul.mubr.msk.f32.gmra.mrb[4].mxu0 %vm85_vm2, %v1437_v53  ;;  %1136 = vmatprep.subr.bf16.mxu1 %v1135_v41 }
  0x76   :  { %221 = vmatprep.mubr.f32.mxu0 %v1436_v0 }
  0x78   :  { %1138 = vmatpush1.bf16.msra.mxu1 %v1137_v47 }
  0x79   :  { %1046 = vmatmul.mubr.msk.f32.gmra.mrb[6].mxu0 %vm86_vm3, %v1437_v53  ;;  %1140 = vmatprep.subr.bf16.mxu1 %v1139_v48 }
  0x7a   :  { %227 = vmatprep.mubr.f32.mxu0 %v1436_v0 }
  0x7d   :  { %1047 = vmatmul.mubr.msk.f32.gmra.mrb[8].mxu0 %vm87_vm4, %v1437_v53 }
  0x7e   :  { %233 = vmatprep.mubr.f32.mxu0 %v1436_v0 }
  0x81   :  { %1048 = vmatmul.mubr.msk.f32.gmra.mrb[10].mxu0 %vm88_vm5, %v1437_v53 }
  0x82   :  { %239 = vmatprep.mubr.f32.mxu0 %v1436_v0 }
  0x85   :  { %1049 = vmatmul.mubr.msk.f32.gmra.mrb[12].mxu0 %vm89_vm6, %v1437_v53 }
  0x86   :  { %245 = vmatprep.mubr.f32.mxu0 %v1436_v0 }
  0x89   :  { %1050 = vmatmul.mubr.msk.f32.gmra.mrb[14].mxu0 %vm90_vm7, %v1437_v53  ;;  %v1141_v53 = vpack.c.bf16 %v432_v50, %v430_v49 }
  0x8a   :  { %349 = vmatprep.mubr.f32.mxu0 %v1436_v0 }
  0x8b   :  { %1142 = vmatpush1.bf16.msra.mxu1 %v1141_v53  ;;  %v252_v53 = vld [vmem:[#allocation2] sm:$0xff] }
  0x8c   :  { %1144 = vmatprep.subr.bf16.mxu1 %v1143_v54  ;;  %v253_v54 = vld [vmem:[#allocation2 + $0x8] sm:$0xff] }
  0x8f   :  { %1146 = vmatpush1.bf16.msra.mxu1 %v1145_v59  ;;  %v258_v59 = vld [vmem:[#allocation2 + $0x30] sm:$0xff] }
  0x90   :  { %1148 = vmatprep.subr.bf16.mxu1 %v1147_v60  ;;  %v259_v60 = vld [vmem:[#allocation2 + $0x38] sm:$0xff] }
  0x93   :  { %1150 = vmatpush1.bf16.msra.mxu1 %v1149_v2  ;;  %v465_v2 = vld [vmem:[#allocation8 + $0x218] sm:$0xff] }
  0x94   :  { %1152 = vmatprep.subr.bf16.mxu1 %v1151_v3  ;;  %v462_v3 = vld [vmem:[#allocation8 + $0x200] sm:$0xff]  ;;  %v1171_v4 = vpack.c.bf16 %v465_v2, %v463_v1  ;;  %v504_v2 = vld [vmem:[#allocation8 + $0x350] sm:$0xff] }
  0x95   :  { %v502_v1 = vld [vmem:[#allocation8 + $0x340] sm:$0xff] }
  0x97   :  { %1154 = vmatpush1.bf16.msra.mxu1 %v1153_v8  ;;  %v1173_v8 = vpack.c.bf16 %v464_v5, %v462_v3  ;;  %v507_v3 = vld [vmem:[#allocation8 + $0x368] sm:$0xff]  ;;  %v1213_v5 = vpack.c.bf16 %v504_v2, %v502_v1  ;;  %v534_v2 = vld [vmem:[#allocation8 + $0x440] sm:$0xff] }
  0x98   :  { %1156 = vmatprep.subr.bf16.mxu1 %v1155_v9  ;;  %v1175_v9 = vpack.c.bf16 %v469_v7, %v467_v6  ;;  %v506_v7 = vld [vmem:[#allocation8 + $0x360] sm:$0xff] }
  0x9b   :  { %1158 = vmatpush1.bf16.msra.mxu1 %v1157_v14 }
  0x9c   :  { %1160 = vmatprep.subr.bf16.mxu1 %v1159_v15  ;;  %v470_v15 = vld [vmem:[#allocation8 + $0x240] sm:$0xff] }
  0x9d   :  { %v1181_v19 = vpack.c.bf16 %v472_v16, %v470_v15  ;;  %v517_v15 = vld [vmem:[#allocation8 + $0x3b8] sm:$0xff] }
  0x9f   :  { %1162 = vmatpush1.bf16.msra.mxu1 %v1161_v20  ;;  %v1183_v20 = vpack.c.bf16 %v477_v18, %v475_v17  ;;  %v514_v18 = vld [vmem:[#allocation8 + $0x3a0] sm:$0xff] }
  0xa0   :  { %1164 = vmatprep.subr.bf16.mxu1 %v1163_v21  ;;  %v474_v21 = vld [vmem:[#allocation8 + $0x260] sm:$0xff] }
  0xa1   :  { %v1185_v25 = vpack.c.bf16 %v476_v22, %v474_v21  ;;  %v521_v21 = vld [vmem:[#allocation8 + $0x3d8] sm:$0xff] }
  0xa3   :  { %1166 = vmatpush1.bf16.msra.mxu1 %v1165_v26  ;;  %v1187_v26 = vpack.c.bf16 %v481_v24, %v479_v23 }
  0xa4   :  { %1168 = vmatprep.subr.bf16.mxu1 %v1167_v27  ;;  %v478_v27 = vld [vmem:[#allocation8 + $0x280] sm:$0xff] }
  0xa7   :  { %1170 = vmatpush1.bf16.msra.mxu1 %v1169_v63 }
 0x140   :  { %v205_v28 = vpop.f32.mrb[0].mxu0 }
 0x141   :  { %v207_v29 = vpop.f32.mrb[1].mxu0 }
 0x144   :  { %v211_v30 = vpop.f32.mrb[2].mxu0 }
 0x145   :  { %v1093_v31 = vpack.c.bf16 %v211_v30, %v205_v28  ;;  %v213_v32 = vpop.f32.mrb[3].mxu0  ;;  %v480_v28 = vld [vmem:[#allocation8 + $0x290] sm:$0xff]  ;;  %v485_v30 = vld [vmem:[#allocation8 + $0x2b8] sm:$0xff] }
 0x146   :  { %v1091_v33 = vpack.c.bf16 %v213_v32, %v207_v29  ;;  %v483_v29 = vld [vmem:[#allocation8 + $0x2a8] sm:$0xff] }
 0x147   :  { %v1191_v32 = vpack.c.bf16 %v485_v30, %v483_v29 }
 0x148   :  { %v217_v34 = vpop.f32.mrb[4].mxu0  ;;  %1092 = vmatprep.subr.bf16.mxu0 %v1091_v33  ;;  %v482_v33 = vld [vmem:[#allocation8 + $0x2a0] sm:$0xff] }
 0x149   :  { %v219_v35 = vpop.f32.mrb[5].mxu0  ;;  %1094 = vmatpush1.bf16.msra.mxu0 %v1093_v31  ;;  %v1189_v31 = vpack.c.bf16 %v480_v28, %v478_v27 }
 0x14c   :  { %v223_v36 = vpop.f32.mrb[6].mxu0 }
 0x14d   :  { %v1097_v37 = vpack.c.bf16 %v223_v36, %v217_v34  ;;  %v225_v38 = vpop.f32.mrb[7].mxu0  ;;  %v484_v34 = vld [vmem:[#allocation8 + $0x2b0] sm:$0xff]  ;;  %v489_v36 = vld [vmem:[#allocation8 + $0x2d8] sm:$0xff] }
 0x14e   :  { %v1095_v39 = vpack.c.bf16 %v225_v38, %v219_v35  ;;  %v487_v35 = vld [vmem:[#allocation8 + $0x2c8] sm:$0xff] }
 0x14f   :  { %v1195_v38 = vpack.c.bf16 %v489_v36, %v487_v35 }
 0x150   :  { %v229_v40 = vpop.f32.mrb[8].mxu0  ;;  %1096 = vmatprep.subr.bf16.mxu0 %v1095_v39  ;;  %v486_v39 = vld [vmem:[#allocation8 + $0x2c0] sm:$0xff] }
 0x151   :  { %v231_v41 = vpop.f32.mrb[9].mxu0  ;;  %1098 = vmatpush1.bf16.msra.mxu0 %v1097_v37  ;;  %v1193_v37 = vpack.c.bf16 %v484_v34, %v482_v33 }
 0x154   :  { %v235_v42 = vpop.f32.mrb[10].mxu0 }
 0x155   :  { %v1101_v43 = vpack.c.bf16 %v235_v42, %v229_v40  ;;  %v237_v44 = vpop.f32.mrb[11].mxu0  ;;  %v488_v40 = vld [vmem:[#allocation8 + $0x2d0] sm:$0xff]  ;;  %v493_v42 = vld [vmem:[#allocation8 + $0x2f8] sm:$0xff] }
 0x156   :  { %v1099_v46 = vpack.c.bf16 %v237_v44, %v231_v41  ;;  %v491_v41 = vld [vmem:[#allocation8 + $0x2e8] sm:$0xff] }
 0x157   :  { %v1199_v44 = vpack.c.bf16 %v493_v42, %v491_v41  ;;  %v520_v41 = vld [vmem:[#allocation8 + $0x3d0] sm:$0xff] }
 0x158   :  { %v241_v47 = vpop.f32.mrb[12].mxu0  ;;  %1100 = vmatprep.subr.bf16.mxu0 %v1099_v46  ;;  %v490_v46 = vld [vmem:[#allocation8 + $0x2e0] sm:$0xff] }
 0x159   :  { %v243_v48 = vpop.f32.mrb[13].mxu0  ;;  %1102 = vmatpush1.bf16.msra.mxu0 %v1101_v43  ;;  %v1197_v43 = vpack.c.bf16 %v488_v40, %v486_v39  ;;  %v518_v40 = vld [vmem:[#allocation8 + $0x3c0] sm:$0xff] }
 0x15a   :  { %v1229_v42 = vpack.c.bf16 %v520_v41, %v518_v40  ;;  %v565_v40 = vld [vmem:[#allocation8 + $0x538] sm:$0xff] }
 0x15c   :  { %v247_v49 = vpop.f32.mrb[14].mxu0 }
 0x15d   :  { %v1105_v50 = vpack.c.bf16 %v247_v49, %v241_v47  ;;  %v249_v51 = vpop.f32.mrb[15].mxu0  ;;  %v492_v47 = vld [vmem:[#allocation8 + $0x2f0] sm:$0xff]  ;;  %v497_v49 = vld [vmem:[#allocation8 + $0x318] sm:$0xff] }
 0x15e   :  { %v1103_v52 = vpack.c.bf16 %v249_v51, %v243_v48  ;;  %v495_v48 = vld [vmem:[#allocation8 + $0x308] sm:$0xff] }
 0x15f   :  { %v1203_v51 = vpack.c.bf16 %v497_v49, %v495_v48  ;;  %v524_v48 = vld [vmem:[#allocation8 + $0x3f0] sm:$0xff] }
 0x160   :  { %1104 = vmatprep.subr.bf16.mxu0 %v1103_v52  ;;  %v494_v52 = vld [vmem:[#allocation8 + $0x300] sm:$0xff] }
 0x161   :  { %1106 = vmatpush1.bf16.msra.mxu0 %v1105_v50  ;;  %v1201_v50 = vpack.c.bf16 %v492_v47, %v490_v46  ;;  %v522_v47 = vld [vmem:[#allocation8 + $0x3e0] sm:$0xff] }
 0x162   :  { %1172 = vmatprep.subr.bf16.mxu0 %v1171_v4  ;;  %v509_v4 = vld [vmem:[#allocation8 + $0x378] sm:$0xff]  ;;  %v1233_v49 = vpack.c.bf16 %v524_v48, %v522_v47 }
 0x163   :  { %v1215_v6 = vpack.c.bf16 %v509_v4, %v507_v3  ;;  %v536_v3 = vld [vmem:[#allocation8 + $0x450] sm:$0xff]  ;;  %v539_v4 = vld [vmem:[#allocation8 + $0x468] sm:$0xff]  ;;  %v569_v47 = vld [vmem:[#allocation8 + $0x558] sm:$0xff] }
 0x164   :  { %1051 = vmatmul.mubr.msk.f32.vlgmr.msra.gmra.mrb[16].mxu0 %vm260_vm8, %v252_v53  ;;  %v496_v53 = vld [vmem:[#allocation8 + $0x310] sm:$0xff] }
 0x165   :  { %355 = vmatprep.mubr.f32.mxu0 %v1436_v0  ;;  %1174 = vmatpush1.bf16.msra.mxu0 %v1173_v8  ;;  %v508_v8 = vld [vmem:[#allocation8 + $0x370] sm:$0xff] }
 0x166   :  { %1176 = vmatprep.subr.bf16.mxu0 %v1175_v9  ;;  %v511_v9 = vld [vmem:[#allocation8 + $0x388] sm:$0xff]  ;;  %v1217_v11 = vpack.c.bf16 %v508_v8, %v506_v7  ;;  %v538_v8 = vld [vmem:[#allocation8 + $0x460] sm:$0xff] }
 0x168   :  { %1052 = vmatmul.mubr.msk.f32.gmra.mrb[18].mxu0 %vm260_vm8, %v253_v54  ;;  %v499_v54 = vld [vmem:[#allocation8 + $0x328] sm:$0xff] }
 0x169   :  { %361 = vmatprep.mubr.f32.mxu0 %v1436_v0  ;;  %1178 = vmatpush1.bf16.msra.mxu0 %v1177_v13  ;;  %v512_v13 = vld [vmem:[#allocation8 + $0x390] sm:$0xff] }
 0x16c   :  { %1053 = vmatmul.mubr.msk.f32.gmra.mrb[20].mxu0 %vm260_vm8, %v254_v55  ;;  %v501_v55 = vld [vmem:[#allocation8 + $0x338] sm:$0xff] }
 0x16d   :  { %367 = vmatprep.mubr.f32.mxu0 %v1436_v0 }
 0x170   :  { %1054 = vmatmul.mubr.msk.f32.gmra.mrb[22].mxu0 %vm260_vm8, %v255_v56  ;;  %v1205_v56 = vpack.c.bf16 %v496_v53, %v494_v52  ;;  %v526_v52 = vld [vmem:[#allocation8 + $0x400] sm:$0xff] }
 0x171   :  { %373 = vmatprep.mubr.f32.mxu0 %v1436_v0 }
 0x174   :  { %1055 = vmatmul.mubr.msk.f32.gmra.mrb[24].mxu0 %vm260_vm8, %v256_v57  ;;  %v1207_v57 = vpack.c.bf16 %v501_v55, %v499_v54  ;;  %v528_v54 = vld [vmem:[#allocation8 + $0x410] sm:$0xff]  ;;  %v531_v55 = vld [vmem:[#allocation8 + $0x428] sm:$0xff] }
 0x175   :  { %379 = vmatprep.mubr.f32.mxu0 %v1436_v0 }
 0x178   :  { %1056 = vmatmul.mubr.msk.f32.gmra.mrb[26].mxu0 %vm260_vm8, %v257_v58  ;;  %v498_v58 = vld [vmem:[#allocation8 + $0x320] sm:$0xff] }
 0x179   :  { %385 = vmatprep.mubr.f32.mxu0 %v1436_v0 }
 0x17c   :  { %1057 = vmatmul.mubr.msk.f32.gmra.mrb[28].mxu0 %vm260_vm8, %v258_v59  ;;  %v500_v59 = vld [vmem:[#allocation8 + $0x330] sm:$0xff] }
 0x17d   :  { %391 = vmatprep.mubr.f32.mxu0 %v1436_v0  ;;  %v473_v0 = vld [vmem:[#allocation8 + $0x258] sm:$0xff]  ;;  %v1209_v62 = vpack.c.bf16 %v500_v59, %v498_v58  ;;  %v530_v59 = vld [vmem:[#allocation8 + $0x420] sm:$0xff] }
 0x17e   :  { %v1179_v14 = vpack.c.bf16 %v473_v0, %v471_v12  ;;  %v1219_v12 = vpack.c.bf16 %v513_v10, %v511_v9  ;;  %v510_v0 = vld [vmem:[#allocation8 + $0x380] sm:$0xff]  ;;  %v540_v9 = vld [vmem:[#allocation8 + $0x470] sm:$0xff]  ;;  %v543_v10 = vld [vmem:[#allocation8 + $0x488] sm:$0xff] }
 0x17f   :  { %v1221_v16 = vpack.c.bf16 %v512_v13, %v510_v0  ;;  %v542_v13 = vld [vmem:[#allocation8 + $0x480] sm:$0xff] }
 0x180   :  { %1058 = vmatmul.mubr.msk.f32.gmra.mrb[30].mxu0 %vm260_vm8, %v259_v60  ;;  %1180 = vmatprep.subr.bf16.mxu0 %v1179_v14  ;;  %v503_v60 = vld [vmem:[#allocation8 + $0x348] sm:$0xff] }
 0x181   :  { %1182 = vmatpush1.bf16.msra.mxu0 %v1181_v19  ;;  %v1211_v63 = vpack.c.bf16 %v505_v61, %v503_v60  ;;  %v515_v14 = vld [vmem:[#allocation8 + $0x3a8] sm:$0xff]  ;;  %v516_v19 = vld [vmem:[#allocation8 + $0x3b0] sm:$0xff] }
 0x182   :  { %1184 = vmatprep.subr.bf16.mxu0 %v1183_v20  ;;  %v1223_v17 = vpack.c.bf16 %v517_v15, %v515_v14  ;;  %v519_v20 = vld [vmem:[#allocation8 + $0x3c8] sm:$0xff]  ;;  %v1225_v22 = vpack.c.bf16 %v516_v19, %v514_v18  ;;  %v532_v60 = vld [vmem:[#allocation8 + $0x430] sm:$0xff]  ;;  %v546_v19 = vld [vmem:[#allocation8 + $0x4a0] sm:$0xff] }
 0x183   :  { %v1227_v23 = vpack.c.bf16 %v521_v21, %v519_v20  ;;  %v535_v61 = vld [vmem:[#allocation8 + $0x448] sm:$0xff]  ;;  %v544_v14 = vld [vmem:[#allocation8 + $0x490] sm:$0xff] }
 0x184   :  { %v547_v15 = vld [vmem:[#allocation8 + $0x4a8] sm:$0xff]  ;;  %v548_v20 = vld [vmem:[#allocation8 + $0x4b0] sm:$0xff] }
 0x185   :  { %1186 = vmatpush1.bf16.msra.mxu0 %v1185_v25  ;;  %v551_v21 = vld [vmem:[#allocation8 + $0x4c8] sm:$0xff] }
 0x186   :  { %1188 = vmatprep.subr.bf16.mxu0 %v1187_v26 }
 0x189   :  { %1190 = vmatpush1.bf16.msra.mxu0 %v1189_v31 }
 0x18a   :  { %1192 = vmatprep.subr.bf16.mxu0 %v1191_v32 }
 0x18d   :  { %1194 = vmatpush1.bf16.msra.mxu0 %v1193_v37 }
 0x18e   :  { %1196 = vmatprep.subr.bf16.mxu0 %v1195_v38 }
 0x191   :  { %1198 = vmatpush1.bf16.msra.mxu0 %v1197_v43  ;;  %v523_v43 = vld [vmem:[#allocation8 + $0x3e8] sm:$0xff] }
 0x192   :  { %1200 = vmatprep.subr.bf16.mxu0 %v1199_v44  ;;  %v525_v44 = vld [vmem:[#allocation8 + $0x3f8] sm:$0xff] }
 0x193   :  { %v1231_v46 = vpack.c.bf16 %v525_v44, %v523_v43  ;;  %v562_v43 = vld [vmem:[#allocation8 + $0x520] sm:$0xff]  ;;  %v564_v44 = vld [vmem:[#allocation8 + $0x530] sm:$0xff] }
 0x194   :  { %v1273_v48 = vpack.c.bf16 %v564_v44, %v562_v43 }
 0x195   :  { %1202 = vmatpush1.bf16.msra.mxu0 %v1201_v50  ;;  %v527_v50 = vld [vmem:[#allocation8 + $0x408] sm:$0xff] }
 0x196   :  { %1204 = vmatprep.subr.bf16.mxu0 %v1203_v51  ;;  %v529_v51 = vld [vmem:[#allocation8 + $0x418] sm:$0xff] }
 0x197   :  { %v1235_v53 = vpack.c.bf16 %v529_v51, %v527_v50  ;;  %v566_v50 = vld [vmem:[#allocation8 + $0x540] sm:$0xff]  ;;  %v568_v51 = vld [vmem:[#allocation8 + $0x550] sm:$0xff] }
 0x199   :  { %1206 = vmatpush1.bf16.msra.mxu0 %v1205_v56  ;;  %v533_v56 = vld [vmem:[#allocation8 + $0x438] sm:$0xff]  ;;  %1236 = vmatprep.subr.bf16.mxu1 %v1235_v53 }
 0x19a   :  { %1208 = vmatprep.subr.bf16.mxu0 %v1207_v57  ;;  %v1237_v57 = vpack.c.bf16 %v528_v54, %v526_v52  ;;  %v1239_v58 = vpack.c.bf16 %v533_v56, %v531_v55  ;;  %v571_v52 = vld [vmem:[#allocation8 + $0x568] sm:$0xff]  ;;  %v573_v53 = vld [vmem:[#allocation8 + $0x578] sm:$0xff]  ;;  %v1277_v54 = vpack.c.bf16 %v568_v51, %v566_v50  ;;  %v570_v56 = vld [vmem:[#allocation8 + $0x560] sm:$0xff] }
 0x19b   :  { %v1279_v55 = vpack.c.bf16 %v573_v53, %v571_v52 }
 0x19d   :  { %1210 = vmatpush1.bf16.msra.mxu0 %v1209_v62  ;;  %v537_v62 = vld [vmem:[#allocation8 + $0x458] sm:$0xff] }
 0x19e   :  { %1212 = vmatprep.subr.bf16.mxu0 %v1211_v63  ;;  %v1241_v63 = vpack.c.bf16 %v532_v60, %v530_v59  ;;  %v1243_v1 = vpack.c.bf16 %v537_v62, %v535_v61  ;;  %v577_v59 = vld [vmem:[#allocation8 + $0x598] sm:$0xff]  ;;  %v574_v62 = vld [vmem:[#allocation8 + $0x580] sm:$0xff] }
 0x1a1   :  { %1214 = vmatpush1.bf16.msra.mxu0 %v1213_v5  ;;  %v541_v5 = vld [vmem:[#allocation8 + $0x478] sm:$0xff] }
 0x1a2   :  { %1216 = vmatprep.subr.bf16.mxu0 %v1215_v6  ;;  %v1245_v6 = vpack.c.bf16 %v536_v3, %v534_v2  ;;  %v1247_v7 = vpack.c.bf16 %v541_v5, %v539_v4  ;;  %v581_v2 = vld [vmem:[#allocation8 + $0x5b8] sm:$0xff]  ;;  %v578_v5 = vld [vmem:[#allocation8 + $0x5a0] sm:$0xff] }
 0x1a5   :  { %1218 = vmatpush1.bf16.msra.mxu0 %v1217_v11  ;;  %v545_v11 = vld [vmem:[#allocation8 + $0x498] sm:$0xff] }
 0x1a6   :  { %1220 = vmatprep.subr.bf16.mxu0 %v1219_v12  ;;  %v1249_v12 = vpack.c.bf16 %v540_v9, %v538_v8  ;;  %v1251_v0 = vpack.c.bf16 %v545_v11, %v543_v10  ;;  %v585_v8 = vld [vmem:[#allocation8 + $0x5d8] sm:$0xff]  ;;  %v598_v11 = vshrl.u32 %v73_v45, 7 }
 0x1a9   :  { %1222 = vmatpush1.bf16.msra.mxu0 %v1221_v16  ;;  %v549_v16 = vld [vmem:[#allocation8 + $0x4b8] sm:$0xff] }
 0x1aa   :  { %1224 = vmatprep.subr.bf16.mxu0 %v1223_v17  ;;  %v1253_v17 = vpack.c.bf16 %v544_v14, %v542_v13  ;;  %v1255_v18 = vpack.c.bf16 %v549_v16, %v547_v15  ;;  %v1553_v13 = vsub.s32 1, %v598_v11 }
 0x1ad   :  { %1226 = vmatpush1.bf16.msra.mxu0 %v1225_v22  ;;  %v553_v22 = vld [vmem:[#allocation8 + $0x4d8] sm:$0xff] }
 0x1ae   :  { %1228 = vmatprep.subr.bf16.mxu0 %v1227_v23  ;;  %v1257_v23 = vpack.c.bf16 %v548_v20, %v546_v19 }
 0x1b1   :  { %1230 = vmatpush1.bf16.msra.mxu0 %v1229_v42 }
 0x1b2   :  { %1232 = vmatprep.subr.bf16.mxu0 %v1231_v46  ;;  %v567_v46 = vld [vmem:[#allocation8 + $0x548] sm:$0xff] }
 0x1b5   :  { %1234 = vmatpush1.bf16.msra.mxu0 %v1233_v49  ;;  %v1275_v49 = vpack.c.bf16 %v569_v47, %v567_v46 }
 0x237   :  { %v351_v24 = vpop.f32.mrb[16].mxu0 }
 0x238   :  { %v353_v25 = vpop.f32.mrb[17].mxu0 }
 0x239   :  { %671 = vmatprep.mubr.f32.mxu1 %v353_v25  ;;  %v550_v25 = vld [vmem:[#allocation8 + $0x4c0] sm:$0xff] }
 0x23a   :  { %672 = vmatmul.mubr.f32.vlgmr.msra.gmra.mrb[0].mxu1 %v351_v24  ;;  %v1259_v24 = vpack.c.bf16 %v553_v22, %v551_v21 }
 0x23b   :  { %v357_v26 = vpop.f32.mrb[18].mxu0  ;;  %1238 = vmatpush1.bf16.msra.mxu1 %v1237_v57  ;;  %v572_v57 = vld [vmem:[#allocation8 + $0x570] sm:$0xff] }
 0x23c   :  { %v359_v27 = vpop.f32.mrb[19].mxu0  ;;  %1240 = vmatprep.subr.bf16.mxu1 %v1239_v58  ;;  %v575_v58 = vld [vmem:[#allocation8 + $0x588] sm:$0xff]  ;;  %v1281_v60 = vpack.c.bf16 %v572_v57, %v570_v56 }
 0x23d   :  { %677 = vmatprep.mubr.f32.mxu1 %v359_v27  ;;  %v555_v27 = vld [vmem:[#allocation8 + $0x4e8] sm:$0xff]  ;;  %v1283_v61 = vpack.c.bf16 %v577_v59, %v575_v58 }
 0x23e   :  { %678 = vmatmul.mubr.f32.gmra.mrb[2].mxu1 %v357_v26  ;;  %v552_v26 = vld [vmem:[#allocation8 + $0x4d0] sm:$0xff] }
 0x23f   :  { %v363_v28 = vpop.f32.mrb[20].mxu0  ;;  %1242 = vmatpush1.bf16.msra.mxu1 %v1241_v63  ;;  %v576_v63 = vld [vmem:[#allocation8 + $0x590] sm:$0xff] }
 0x240   :  { %v365_v29 = vpop.f32.mrb[21].mxu0  ;;  %1244 = vmatprep.subr.bf16.mxu1 %v1243_v1  ;;  %v579_v1 = vld [vmem:[#allocation8 + $0x5a8] sm:$0xff]  ;;  %v1285_v3 = vpack.c.bf16 %v576_v63, %v574_v62 }
 0x241   :  { %683 = vmatprep.mubr.f32.mxu1 %v365_v29  ;;  %v1261_v29 = vpack.c.bf16 %v552_v26, %v550_v25  ;;  %v1287_v4 = vpack.c.bf16 %v581_v2, %v579_v1  ;;  %v582_v1 = vld [vmem:[#allocation8 + $0x5c0] sm:$0xff]  ;;  %v584_v2 = vld [vmem:[#allocation8 + $0x5d0] sm:$0xff] }
 0x242   :  { %684 = vmatmul.mubr.f32.gmra.mrb[4].mxu1 %v363_v28  ;;  %v557_v28 = vld [vmem:[#allocation8 + $0x4f8] sm:$0xff] }
 0x243   :  { %v369_v30 = vpop.f32.mrb[22].mxu0  ;;  %1246 = vmatpush1.bf16.msra.mxu1 %v1245_v6  ;;  %v580_v6 = vld [vmem:[#allocation8 + $0x5b0] sm:$0xff] }
 0x244   :  { %v371_v31 = vpop.f32.mrb[23].mxu0  ;;  %1248 = vmatprep.subr.bf16.mxu1 %v1247_v7  ;;  %v583_v7 = vld [vmem:[#allocation8 + $0x5c8] sm:$0xff]  ;;  %v1289_v9 = vpack.c.bf16 %v580_v6, %v578_v5  ;;  %v589_v5 = vld [vmem:[#allocation8 + $0x5f8] sm:$0xff] }
 0x245   :  { %689 = vmatprep.mubr.f32.mxu1 %v371_v31  ;;  %v554_v31 = vld [vmem:[#allocation8 + $0x4e0] sm:$0xff]  ;;  %v1291_v10 = vpack.c.bf16 %v585_v8, %v583_v7  ;;  %v588_v8 = vld [vmem:[#allocation8 + $0x5f0] sm:$0xff] }
 0x246   :  { %690 = vmatmul.mubr.f32.gmra.mrb[6].mxu1 %v369_v30  ;;  %v1263_v30 = vpack.c.bf16 %v557_v28, %v555_v27  ;;  %v586_v7 = vld [vmem:[#allocation8 + $0x5e0] sm:$0xff] }
 0x247   :  { %v375_v32 = vpop.f32.mrb[24].mxu0  ;;  %1250 = vmatpush1.bf16.msra.mxu1 %v1249_v12  ;;  %v1551_v12 = vsub.s32 0, %v598_v11 }
 0x248   :  { %v377_v33 = vpop.f32.mrb[25].mxu0  ;;  %1252 = vmatprep.subr.bf16.mxu1 %v1251_v0  ;;  %v591_v0 = vld [vmem:[#allocation8 + $0x600] ss:$8 sm:$0x3] }
 0x249   :  { %695 = vmatprep.mubr.f32.mxu1 %v377_v33  ;;  %v559_v33 = vld [vmem:[#allocation8 + $0x508] sm:$0xff]  ;;  %v600_v14 = vrot.slane %v591_v0, %v1551_v12  ;;  %v604_v15 = vrot.slane %v591_v0, %v1553_v13 }
 0x24a   :  { %696 = vmatmul.mubr.f32.gmra.mrb[8].mxu1 %v375_v32  ;;  %v556_v32 = vld [vmem:[#allocation8 + $0x4f0] sm:$0xff] }
 0x24b   :  { %v381_v34 = vpop.f32.mrb[26].mxu0  ;;  %1254 = vmatpush1.bf16.msra.mxu1 %v1253_v17 }
 0x24c   :  { %v383_v35 = vpop.f32.mrb[27].mxu0  ;;  %1256 = vmatprep.subr.bf16.mxu1 %v1255_v18 }
 0x24d   :  { %701 = vmatprep.mubr.f32.mxu1 %v383_v35  ;;  %v1265_v35 = vpack.c.bf16 %v556_v32, %v554_v31 }
 0x24e   :  { %702 = vmatmul.mubr.f32.gmra.mrb[10].mxu1 %v381_v34  ;;  %v561_v34 = vld [vmem:[#allocation8 + $0x518] sm:$0xff] }
 0x24f   :  { %v387_v36 = vpop.f32.mrb[28].mxu0  ;;  %1258 = vmatpush1.bf16.msra.mxu1 %v1257_v23 }
 0x250   :  { %v389_v37 = vpop.f32.mrb[29].mxu0  ;;  %1260 = vmatprep.subr.bf16.mxu1 %v1259_v24 }
 0x251   :  { %707 = vmatprep.mubr.f32.mxu1 %v389_v37  ;;  %v558_v37 = vld [vmem:[#allocation8 + $0x500] sm:$0xff] }
 0x252   :  { %708 = vmatmul.mubr.f32.gmra.mrb[12].mxu1 %v387_v36  ;;  %v1267_v36 = vpack.c.bf16 %v561_v34, %v559_v33 }
 0x253   :  { %v393_v38 = vpop.f32.mrb[30].mxu0  ;;  %1262 = vmatpush1.bf16.msra.mxu1 %v1261_v29 }
 0x254   :  { %v395_v39 = vpop.f32.mrb[31].mxu0  ;;  %1264 = vmatprep.subr.bf16.mxu1 %v1263_v30 }
 0x255   :  { %713 = vmatprep.mubr.f32.mxu1 %v395_v39  ;;  %v563_v39 = vld [vmem:[#allocation8 + $0x528] sm:$0xff] }
 0x256   :  { %714 = vmatmul.mubr.f32.gmra.mrb[14].mxu1 %v393_v38  ;;  %v560_v38 = vld [vmem:[#allocation8 + $0x510] sm:$0xff]  ;;  %v1271_v42 = vpack.c.bf16 %v565_v40, %v563_v39 }
 0x257   :  { %1266 = vmatpush1.bf16.msra.mxu1 %v1265_v35  ;;  %v1269_v41 = vpack.c.bf16 %v560_v38, %v558_v37 }
 0x258   :  { %1268 = vmatprep.subr.bf16.mxu1 %v1267_v36 }
 0x25b   :  { %1270 = vmatpush1.bf16.msra.mxu1 %v1269_v41 }
 0x25c   :  { %1272 = vmatprep.subr.bf16.mxu1 %v1271_v42 }
 0x25f   :  { %1274 = vmatpush1.bf16.msra.mxu1 %v1273_v48 }
 0x260   :  { %1276 = vmatprep.subr.bf16.mxu1 %v1275_v49 }
 0x263   :  { %1278 = vmatpush1.bf16.msra.mxu1 %v1277_v54 }
 0x264   :  { %1280 = vmatprep.subr.bf16.mxu1 %v1279_v55 }
 0x267   :  { %1282 = vmatpush1.bf16.msra.mxu1 %v1281_v60 }
 0x268   :  { %1284 = vmatprep.subr.bf16.mxu1 %v1283_v61 }
 0x26b   :  { %1286 = vmatpush1.bf16.msra.mxu1 %v1285_v3  ;;  %v1293_v3 = vpack.c.bf16 %v584_v2, %v582_v1 }
 0x26c   :  { %1288 = vmatprep.subr.bf16.mxu1 %v1287_v4  ;;  %v587_v4 = vld [vmem:[#allocation8 + $0x5e8] sm:$0xff] }
 0x26d   :  { %v1295_v6 = vpack.c.bf16 %v589_v5, %v587_v4 }
 0x26f   :  { %1290 = vmatpush1.bf16.msra.mxu1 %v1289_v9  ;;  %v1297_v9 = vpack.c.bf16 %v588_v8, %v586_v7 }
 0x270   :  { %1292 = vmatprep.subr.bf16.mxu1 %v1291_v10  ;;  %v593_v10 = vld [vmem:[#allocation8 + $0x610] ss:$8 sm:$0x3] }
 0x271   :  { %v740_v11 = vrot.slane %v593_v10, %v1551_v12  ;;  %v744_v0 = vrot.slane %v593_v10, %v1553_v13 }
 0x273   :  { %1294 = vmatpush1.bf16.msra.mxu1 %v1293_v3 }
 0x274   :  { %1296 = vmatprep.subr.bf16.mxu1 %v1295_v6 }
 0x277   :  { %1298 = vmatpush1.bf16.msra.mxu1 %v1297_v9 }
 0x30d   :  { %v673_v16 = vpop.f32.mrb[0].mxu1 }
 0x30e   :  { %v674_v17 = vadd.f32 %v673_v16, %v600_v14  ;;  %v675_v18 = vpop.f32.mrb[1].mxu1 }
 0x30f   :  { %v676_v19 = vadd.f32 %v675_v18, %v604_v15 }
 0x310   :  { %v720_v22 = vmax.f32 %v674_v17, 0.0 }
 0x311   :  { %v721_v20 = vmax.f32 %v676_v19, 0.0  ;;  %v679_v21 = vpop.f32.mrb[2].mxu1 }
 0x312   :  { %v680_v23 = vadd.f32 %v679_v21, %v600_v14  ;;  %v681_v24 = vpop.f32.mrb[3].mxu1 }
 0x313   :  { %v682_v25 = vadd.f32 %v681_v24, %v604_v15  ;;  %811 = vmatprep.mubr.f32.mxu0 %v721_v20 }
 0x314   :  { %812 = vmatmul.mubr.f32.vlgmr.msra.gmra.mrb[32].mxu0 %v720_v22  ;;  %v722_v27 = vmax.f32 %v680_v23, 0.0 }
 0x315   :  { %v723_v45 = vmax.f32 %v682_v25, 0.0  ;;  %v685_v26 = vpop.f32.mrb[4].mxu1 }
 0x316   :  { %v686_v28 = vadd.f32 %v685_v26, %v600_v14  ;;  %v687_v29 = vpop.f32.mrb[5].mxu1 }
 0x317   :  { %v688_v30 = vadd.f32 %v687_v29, %v604_v15  ;;  %817 = vmatprep.mubr.f32.mxu0 %v723_v45 }
 0x318   :  { %818 = vmatmul.mubr.f32.gmra.mrb[34].mxu0 %v722_v27  ;;  %v724_v33 = vmax.f32 %v686_v28, 0.0 }
 0x319   :  { %v725_v31 = vmax.f32 %v688_v30, 0.0  ;;  %v691_v32 = vpop.f32.mrb[6].mxu1 }
 0x31a   :  { %v692_v34 = vadd.f32 %v691_v32, %v600_v14  ;;  %v693_v35 = vpop.f32.mrb[7].mxu1 }
 0x31b   :  { %v694_v36 = vadd.f32 %v693_v35, %v604_v15  ;;  %823 = vmatprep.mubr.f32.mxu0 %v725_v31 }
 0x31c   :  { %824 = vmatmul.mubr.f32.gmra.mrb[36].mxu0 %v724_v33  ;;  %v726_v39 = vmax.f32 %v692_v34, 0.0 }
 0x31d   :  { %v727_v37 = vmax.f32 %v694_v36, 0.0  ;;  %v697_v38 = vpop.f32.mrb[8].mxu1 }
 0x31e   :  { %v698_v40 = vadd.f32 %v697_v38, %v600_v14  ;;  %v699_v41 = vpop.f32.mrb[9].mxu1 }
 0x31f   :  { %v700_v42 = vadd.f32 %v699_v41, %v604_v15  ;;  %829 = vmatprep.mubr.f32.mxu0 %v727_v37 }
 0x320   :  { %830 = vmatmul.mubr.f32.gmra.mrb[38].mxu0 %v726_v39  ;;  %v728_v46 = vmax.f32 %v698_v40, 0.0 }
 0x321   :  { %v729_v43 = vmax.f32 %v700_v42, 0.0  ;;  %v703_v44 = vpop.f32.mrb[10].mxu1 }
 0x322   :  { %v704_v47 = vadd.f32 %v703_v44, %v600_v14  ;;  %v705_v48 = vpop.f32.mrb[11].mxu1 }
 0x323   :  { %v706_v49 = vadd.f32 %v705_v48, %v604_v15  ;;  %835 = vmatprep.mubr.f32.mxu0 %v729_v43 }
 0x324   :  { %836 = vmatmul.mubr.f32.gmra.mrb[40].mxu0 %v728_v46  ;;  %v730_v52 = vmax.f32 %v704_v47, 0.0 }
 0x325   :  { %v731_v50 = vmax.f32 %v706_v49, 0.0  ;;  %v709_v51 = vpop.f32.mrb[12].mxu1 }
 0x326   :  { %v710_v53 = vadd.f32 %v709_v51, %v600_v14  ;;  %v711_v54 = vpop.f32.mrb[13].mxu1 }
 0x327   :  { %v712_v55 = vadd.f32 %v711_v54, %v604_v15  ;;  %841 = vmatprep.mubr.f32.mxu0 %v731_v50 }
 0x328   :  { %842 = vmatmul.mubr.f32.gmra.mrb[42].mxu0 %v730_v52  ;;  %v732_v58 = vmax.f32 %v710_v53, 0.0 }
 0x329   :  { %v733_v56 = vmax.f32 %v712_v55, 0.0  ;;  %v715_v57 = vpop.f32.mrb[14].mxu1 }
 0x32a   :  { %v716_v59 = vadd.f32 %v715_v57, %v600_v14  ;;  %v717_v60 = vpop.f32.mrb[15].mxu1 }
 0x32b   :  { %v718_v61 = vadd.f32 %v717_v60, %v604_v15  ;;  %847 = vmatprep.mubr.f32.mxu0 %v733_v56 }
 0x32c   :  { %848 = vmatmul.mubr.f32.gmra.mrb[44].mxu0 %v732_v58  ;;  %v734_v63 = vmax.f32 %v716_v59, 0.0 }
 0x32d   :  { %v735_v62 = vmax.f32 %v718_v61, 0.0 }
 0x32f   :  { %853 = vmatprep.mubr.f32.mxu0 %v735_v62  ;;  %v595_v62 = vld [vmem:[#allocation8 + $0x620] ss:$8 sm:$0x3] }
 0x330   :  { %854 = vmatmul.mubr.f32.gmra.mrb[46].mxu0 %v734_v63  ;;  %v880_v63 = vrot.slane %v595_v62, %v1551_v12  ;;  %v884_v1 = vrot.slane %v595_v62, %v1553_v13 }
 0x3e7   :  { %v813_v14 = vpop.f32.mrb[32].mxu0 }
 0x3e8   :  { %v814_v15 = vadd.f32 %v813_v14, %v740_v11  ;;  %v815_v16 = vpop.f32.mrb[33].mxu0 }
 0x3e9   :  { %v816_v17 = vadd.f32 %v815_v16, %v744_v0 }
 0x3ea   :  { %v860_v20 = vmax.f32 %v814_v15, 0.0 }
 0x3eb   :  { %v861_v18 = vmax.f32 %v816_v17, 0.0  ;;  %v819_v19 = vpop.f32.mrb[34].mxu0 }
 0x3ec   :  { %v820_v21 = vadd.f32 %v819_v19, %v740_v11  ;;  %v821_v22 = vpop.f32.mrb[35].mxu0 }
 0x3ed   :  { %v822_v23 = vadd.f32 %v821_v22, %v744_v0  ;;  %951 = vmatprep.mubr.f32.mxu1 %v861_v18 }
 0x3ee   :  { %952 = vmatmul.mubr.f32.vlgmr.msra.gmra.mrb[16].mxu1 %v860_v20  ;;  %v862_v45 = vmax.f32 %v820_v21, 0.0 }
 0x3ef   :  { %v863_v24 = vmax.f32 %v822_v23, 0.0  ;;  %v825_v25 = vpop.f32.mrb[36].mxu0 }
 0x3f0   :  { %v826_v26 = vadd.f32 %v825_v25, %v740_v11  ;;  %v827_v27 = vpop.f32.mrb[37].mxu0 }
 0x3f1   :  { %v828_v28 = vadd.f32 %v827_v27, %v744_v0  ;;  %957 = vmatprep.mubr.f32.mxu1 %v863_v24 }
 0x3f2   :  { %958 = vmatmul.mubr.f32.gmra.mrb[18].mxu1 %v862_v45  ;;  %v864_v31 = vmax.f32 %v826_v26, 0.0 }
 0x3f3   :  { %v865_v29 = vmax.f32 %v828_v28, 0.0  ;;  %v831_v30 = vpop.f32.mrb[38].mxu0 }
 0x3f4   :  { %v832_v32 = vadd.f32 %v831_v30, %v740_v11  ;;  %v833_v33 = vpop.f32.mrb[39].mxu0 }
 0x3f5   :  { %v834_v34 = vadd.f32 %v833_v33, %v744_v0  ;;  %963 = vmatprep.mubr.f32.mxu1 %v865_v29 }
 0x3f6   :  { %964 = vmatmul.mubr.f32.gmra.mrb[20].mxu1 %v864_v31  ;;  %v866_v37 = vmax.f32 %v832_v32, 0.0 }
 0x3f7   :  { %v867_v35 = vmax.f32 %v834_v34, 0.0  ;;  %v837_v36 = vpop.f32.mrb[40].mxu0 }
 0x3f8   :  { %v838_v38 = vadd.f32 %v837_v36, %v740_v11  ;;  %v839_v39 = vpop.f32.mrb[41].mxu0 }
 0x3f9   :  { %v840_v40 = vadd.f32 %v839_v39, %v744_v0  ;;  %969 = vmatprep.mubr.f32.mxu1 %v867_v35 }
 0x3fa   :  { %970 = vmatmul.mubr.f32.gmra.mrb[22].mxu1 %v866_v37  ;;  %v868_v43 = vmax.f32 %v838_v38, 0.0 }
 0x3fb   :  { %v869_v41 = vmax.f32 %v840_v40, 0.0  ;;  %v843_v42 = vpop.f32.mrb[42].mxu0 }
 0x3fc   :  { %v844_v44 = vadd.f32 %v843_v42, %v740_v11  ;;  %v845_v46 = vpop.f32.mrb[43].mxu0 }
 0x3fd   :  { %v846_v47 = vadd.f32 %v845_v46, %v744_v0  ;;  %975 = vmatprep.mubr.f32.mxu1 %v869_v41 }
 0x3fe   :  { %976 = vmatmul.mubr.f32.gmra.mrb[24].mxu1 %v868_v43  ;;  %v870_v50 = vmax.f32 %v844_v44, 0.0 }
 0x3ff   :  { %v871_v48 = vmax.f32 %v846_v47, 0.0  ;;  %v849_v49 = vpop.f32.mrb[44].mxu0 }
 0x400   :  { %v850_v51 = vadd.f32 %v849_v49, %v740_v11  ;;  %v851_v52 = vpop.f32.mrb[45].mxu0 }
 0x401   :  { %v852_v53 = vadd.f32 %v851_v52, %v744_v0  ;;  %981 = vmatprep.mubr.f32.mxu1 %v871_v48 }
 0x402   :  { %982 = vmatmul.mubr.f32.gmra.mrb[26].mxu1 %v870_v50  ;;  %v872_v56 = vmax.f32 %v850_v51, 0.0 }
 0x403   :  { %v873_v54 = vmax.f32 %v852_v53, 0.0  ;;  %v855_v55 = vpop.f32.mrb[46].mxu0 }
 0x404   :  { %v856_v57 = vadd.f32 %v855_v55, %v740_v11  ;;  %v857_v58 = vpop.f32.mrb[47].mxu0 }
 0x405   :  { %v858_v59 = vadd.f32 %v857_v58, %v744_v0  ;;  %987 = vmatprep.mubr.f32.mxu1 %v873_v54 }
 0x406   :  { %988 = vmatmul.mubr.f32.gmra.mrb[28].mxu1 %v872_v56  ;;  %v874_v61 = vmax.f32 %v856_v57, 0.0 }
 0x407   :  { %v875_v60 = vmax.f32 %v858_v59, 0.0 }
 0x409   :  { %993 = vmatprep.mubr.f32.mxu1 %v875_v60 }
 0x40a   :  { %994 = vmatmul.mubr.f32.gmra.mrb[30].mxu1 %v874_v61 }
 0x4c1   :  { %v953_v2 = vpop.f32.mrb[16].mxu1 }
 0x4c2   :  { %v954_v3 = vadd.f32 %v953_v2, %v880_v63  ;;  %v955_v4 = vpop.f32.mrb[17].mxu1 }
 0x4c3   :  { %v956_v5 = vadd.f32 %v955_v4, %v884_v1 }
 0x4c4   :  { %1000 = vst [vmem:[#allocation10] sm:$0xff] %v954_v3 }
 0x4c5   :  { %1001 = vst [vmem:[#allocation10 + $0x8] sm:$0xff] %v956_v5  ;;  %v959_v6 = vpop.f32.mrb[18].mxu1 }
 0x4c6   :  { %v960_v7 = vadd.f32 %v959_v6, %v880_v63  ;;  %v961_v8 = vpop.f32.mrb[19].mxu1 }
 0x4c7   :  { %v962_v9 = vadd.f32 %v961_v8, %v884_v1 }
 0x4c8   :  { %1002 = vst [vmem:[#allocation10 + $0x10] sm:$0xff] %v960_v7 }
 0x4c9   :  { %1003 = vst [vmem:[#allocation10 + $0x18] sm:$0xff] %v962_v9  ;;  %v965_v10 = vpop.f32.mrb[20].mxu1 }
 0x4ca   :  { %v966_v11 = vadd.f32 %v965_v10, %v880_v63  ;;  %v967_v0 = vpop.f32.mrb[21].mxu1 }
 0x4cb   :  { %v968_v14 = vadd.f32 %v967_v0, %v884_v1 }
 0x4cc   :  { %1004 = vst [vmem:[#allocation10 + $0x20] sm:$0xff] %v966_v11 }
 0x4cd   :  { %1005 = vst [vmem:[#allocation10 + $0x28] sm:$0xff] %v968_v14  ;;  %v971_v12 = vpop.f32.mrb[22].mxu1 }
 0x4ce   :  { %v972_v13 = vadd.f32 %v971_v12, %v880_v63  ;;  %v973_v15 = vpop.f32.mrb[23].mxu1 }
 0x4cf   :  { %v974_v16 = vadd.f32 %v973_v15, %v884_v1 }
 0x4d0   :  { %1006 = vst [vmem:[#allocation10 + $0x30] sm:$0xff] %v972_v13 }
 0x4d1   :  { %1007 = vst [vmem:[#allocation10 + $0x38] sm:$0xff] %v974_v16  ;;  %v977_v17 = vpop.f32.mrb[24].mxu1 }
 0x4d2   :  { %v978_v18 = vadd.f32 %v977_v17, %v880_v63  ;;  %v979_v19 = vpop.f32.mrb[25].mxu1 }
 0x4d3   :  { %v980_v20 = vadd.f32 %v979_v19, %v884_v1 }
 0x4d4   :  { %1008 = vst [vmem:[#allocation10 + $0x40] sm:$0xff] %v978_v18 }
 0x4d5   :  { %1009 = vst [vmem:[#allocation10 + $0x48] sm:$0xff] %v980_v20  ;;  %v983_v21 = vpop.f32.mrb[26].mxu1 }
 0x4d6   :  { %v984_v22 = vadd.f32 %v983_v21, %v880_v63  ;;  %v985_v23 = vpop.f32.mrb[27].mxu1 }
 0x4d7   :  { %v986_v24 = vadd.f32 %v985_v23, %v884_v1 }
 0x4d8   :  { %1010 = vst [vmem:[#allocation10 + $0x50] sm:$0xff] %v984_v22 }
 0x4d9   :  { %1011 = vst [vmem:[#allocation10 + $0x58] sm:$0xff] %v986_v24  ;;  %v989_v25 = vpop.f32.mrb[28].mxu1 }
 0x4da   :  { %v990_v45 = vadd.f32 %v989_v25, %v880_v63  ;;  %v991_v26 = vpop.f32.mrb[29].mxu1 }
 0x4db   :  { %v992_v27 = vadd.f32 %v991_v26, %v884_v1 }
 0x4dc   :  { %1012 = vst [vmem:[#allocation10 + $0x60] sm:$0xff] %v990_v45 }
 0x4dd   :  { %1013 = vst [vmem:[#allocation10 + $0x68] sm:$0xff] %v992_v27  ;;  %v995_v28 = vpop.f32.mrb[30].mxu1 }
 0x4de   :  { %v996_v29 = vadd.f32 %v995_v28, %v880_v63  ;;  %v997_v30 = vpop.f32.mrb[31].mxu1 }
 0x4df   :  { %v998_v31 = vadd.f32 %v997_v30, %v884_v1 }
 0x4e0   :  { %1014 = vst [vmem:[#allocation10 + $0x70] sm:$0xff] %v996_v29 }
 0x4e1   :  { %1015 = vst [vmem:[#allocation10 + $0x78] sm:$0xff] %v998_v31 }
 0x4e2   :  { %1409 = shalt.err (!%p1406_p8)
}
 0x4e3   :  { %s1410_s17 = scalar_lea.hbm %s1580_s4, 2048 }
 0x4e4   :  { %p1411_p9 = scmp.ne.s32.totalorder %s1580_s4, %s1410_s17  ;;  %p1414_p10 = scmp.lt.u32.totalorder %s1410_s17, %s1580_s4 }
 0x4e6   :  { %p1416_p11 = pnand %p1414_p10, %p1411_p9 }
 0x4e8   :  { %1419 = shalt.err (!%p1416_p11)
}
 0x4e9   :  { %1027 = dma.vmem_to_hbm [thread:$0]  %s1022_s13, 2048, %s1580_s4, [#allocation4], %s1429_s25, %s1429_s25, %s1430_s26  }
 0x4ea   :  { %1426 = dma.done.wait [#allocation4], 2048  }
 0x4eb   :  { %1427 = vsyncadd [#allocation4], 4294965248 }
 0x4ec   :  { %1031 = vsyncpa [#allocation3], 1 }
 0x4ed   :  { %1032 = vsyncpa [#allocation6], 1 }
 0x4ee   :  { %1033 = vsyncpa [#allocation9], 1 }
 0x4ef   :  { %1034 = vsyncpa [#allocation4], 1 }

</bundles_post_ra>
